<compile_context>
chip_gen: v6e
topology: v6e:2x2x1
jax: 0.10.0
libtpu: 0.0.40
codegen_flags: <defaults>
</compile_context>

<pallas_src>
import jax
import jax.numpy as jnp
from jax.experimental import pallas as pl
from jax.experimental.pallas import tpu as pltpu

EPS = 1e-5  # PyTorch GroupNorm default eps


def _rc_conv_kernel(band_ref, x_ref, scale_ref, shift_ref, w_ref, bias_ref,
                    o_ref, apad_ref, col_ref):
    """One (batch, row-band) tile per grid step.

    band_ref : (1, 1, TH+2, W+2, C) raw input rows incl. 1-row halo & W zero pad
    x_ref    : (1, TH, W, C)        raw input rows (residual branch)
    scale_ref/shift_ref : (1, 1, C) folded GroupNorm scale / shift for sample n
    w_ref    : (9*C, C)             im2col conv weights (matmul dtype)
    bias_ref : (1, 1, C)            conv bias
    o_ref    : (1, TH, W, C)
    apad_ref : VMEM (TH+2, W+2, C) f32      SiLU(GroupNorm(x)) with conv zero pad
    col_ref  : VMEM (TH, W, 9*C) matmul-dtype   im2col buffer
    """
    _, th, w, c = x_ref.shape
    thp, wp, _ = apad_ref.shape
    i = pl.program_id(1)
    h_total = th * pl.num_programs(1)

    # ---- GroupNorm (precomputed per-(n,c) scale/shift) + SiLU, fused (f32) --
    band = band_ref[0, 0]                                    # (TH+2, W+2, C)
    z = band * scale_ref[0] + shift_ref[0]
    a = z * jax.nn.sigmoid(z)

    # ---- zero the conv padding positions (image borders); full aligned store
    row = jax.lax.broadcasted_iota(jnp.int32, (thp, wp, 1), 0) + (i * th - 1)
    colx = jax.lax.broadcasted_iota(jnp.int32, (thp, wp, 1), 1)
    inside = (row >= 0) & (row < h_total) & (colx >= 1) & (colx <= w)
    apad_ref[...] = jnp.where(inside, a, 0.0)

    # ---- im2col: 9 shifted slabs written once into VMEM scratch -------------
    # dy shifts land on the leading axis (alignment free); dx shifts are static
    # sublane-offset reads.
    # TODO(synk): dx = 1, 2 reads could use pltpu.roll (XLU) + masking instead
    #             of sublane-offset loads; kept as plain static slices for
    #             lowering robustness.
    for dy in range(3):
        for dx in range(3):
            k = dy * 3 + dx
            col_ref[:, :, k * c:(k + 1) * c] = (
                apad_ref[dy:dy + th, dx:dx + w, :].astype(col_ref.dtype))

    # ---- single (TH*W, 9C) @ (9C, C) MXU matmul, f32 accumulation ------------
    patches = col_ref[...].reshape(th * w, 9 * c)
    y = jnp.dot(patches, w_ref[...], preferred_element_type=jnp.float32)
    y = y.reshape(th, w, c) + bias_ref[0]

    # ---- residual ------------------------------------------------------------
    o_ref[0] = x_ref[0] + y


def _pick_row_tile(h, w, c, budget_bytes=6 << 20):
    """Largest divisor of h whose per-step VMEM working set fits the budget."""
    best = 1
    for th in range(1, h + 1):
        if h % th:
            continue
        work = (2 * ((th + 2) * (w + 2) * c * 4        # halo'd band block (x2 buf)
                     + 2 * th * w * c * 4)             # x block + out block (x2 buf)
                + (th + 2) * (w + 2) * c * 4           # apad scratch (f32)
                + th * w * 9 * c * 2)                  # im2col scratch (bf16)
        if work <= budget_bytes:
            best = th
    return best


def rc_forward(x_nchw, gamma, beta, w_oihw, b, *, num_groups,
               row_tile=None, matmul_dtype=jnp.bfloat16):
    """RC forward: x + Conv3x3(SiLU(GroupNorm(x))).  x_nchw: (N, C, H, W) f32."""
    x = jnp.transpose(x_nchw, (0, 2, 3, 1)).astype(jnp.float32)       # -> NHWC
    N, H, W, C = x.shape
    assert C % num_groups == 0
    cg = C // num_groups

    th = _pick_row_tile(H, W, C) if row_tile is None else int(row_tile)
    assert H % th == 0, f"row_tile={th} must divide H={H}"
    n_h = H // th

    # ---- GroupNorm statistics: cheap two-pass reduction done outside the conv
    # kernel (per perf review) so the conv pass can be spatially tiled. --------
    xg = x.reshape(N, H * W, num_groups, cg)
    mean_g = jnp.mean(xg, axis=(1, 3))                                 # (N, G)
    var_g = jnp.mean(jnp.square(xg - mean_g[:, None, :, None]), axis=(1, 3))
    inv_g = jax.lax.rsqrt(var_g + EPS)
    mean_c = jnp.repeat(mean_g, cg, axis=1)                            # (N, C)
    inv_c = jnp.repeat(inv_g, cg, axis=1)
    gamma_f = gamma.astype(jnp.float32)[None, :]
    beta_f = beta.astype(jnp.float32)[None, :]
    scale = (inv_c * gamma_f).reshape(N, 1, C)
    shift = (beta_f - mean_c * inv_c * gamma_f).reshape(N, 1, C)

    # ---- halo'd row bands of the spatially zero-padded input (layout plumbing)
    xp = jnp.pad(x, ((0, 0), (1, 1), (1, 1), (0, 0)))                  # (N,H+2,W+2,C)
    row_idx = (jnp.arange(n_h) * th)[:, None] + jnp.arange(th + 2)[None, :]
    bands = xp[:, row_idx]                                             # (N,nH,TH+2,W+2,C)

    # ---- conv weights in im2col layout; bf16 operands for the MXU ------------
    w_col = (jnp.transpose(w_oihw, (2, 3, 1, 0))                       # (3,3,Cin,Cout)
             .reshape(9 * C, C).astype(matmul_dtype))
    bias_r = b.reshape(1, 1, C).astype(jnp.float32)

    # TODO(synk): for C < 128 stages the lane dim is mostly padding; lane
    #             packing (folding W / multiple images into the last dim) is
    #             not implemented here.

    # ---- VMEM budget sized from the actual blocks -----------------------------
    msz = jnp.dtype(matmul_dtype).itemsize
    block_bytes = 2 * ((th + 2) * (W + 2) * C * 4        # band block
                       + 2 * th * W * C * 4              # x block + out block
                       + 3 * C * 4                       # scale + shift + bias
                       + 9 * C * C * msz)                # weights
    scratch_bytes = (th + 2) * (W + 2) * C * 4 + th * W * 9 * C * msz
    vmem_limit = int(min(100 * 2**20, max(8 * 2**20, 2 * (block_bytes + scratch_bytes))))

    out_nhwc = pl.pallas_call(
        _rc_conv_kernel,
        out_shape=jax.ShapeDtypeStruct((N, H, W, C), jnp.float32),
        grid_spec=pltpu.PrefetchScalarGridSpec(
            num_scalar_prefetch=0,
            grid=(N, n_h),
            in_specs=[
                pl.BlockSpec((1, 1, th + 2, W + 2, C),
                             lambda n, i: (n, i, 0, 0, 0)),            # halo'd band
                pl.BlockSpec((1, th, W, C), lambda n, i: (n, i, 0, 0)),  # residual x
                pl.BlockSpec((1, 1, C), lambda n, i: (n, 0, 0)),       # GN scale
                pl.BlockSpec((1, 1, C), lambda n, i: (n, 0, 0)),       # GN shift
                # TODO(synk): constant-index weights could be single-buffered
                #             (pipeline_mode=pl.Buffered(1)) to save VMEM at
                #             large C; left at the default for portability.
                pl.BlockSpec((9 * C, C), lambda n, i: (0, 0)),         # conv weights
                pl.BlockSpec((1, 1, C), lambda n, i: (0, 0, 0)),       # conv bias
            ],
            out_specs=pl.BlockSpec((1, th, W, C), lambda n, i: (n, i, 0, 0)),
            scratch_shapes=[
                pltpu.VMEM((th + 2, W + 2, C), jnp.float32),           # SiLU(GN) pad
                pltpu.VMEM((th, W, 9 * C), matmul_dtype),              # im2col
            ],
        ),
        compiler_params=pltpu.CompilerParams(
            dimension_semantics=("parallel", "parallel"),
            vmem_limit_bytes=vmem_limit),
    )(bands, x, scale, shift, w_col, bias_r)

    return jnp.transpose(out_nhwc, (0, 3, 1, 2))                       # -> NCHW


def rc_reference(x_nchw, gamma, beta, w_oihw, b, *, num_groups):
    """Pure-JAX f32 reference of the same forward pass (NCHW)."""
    N, C, H, W = x_nchw.shape
    xg = x_nchw.reshape(N, num_groups, C // num_groups, H, W)
    mean = jnp.mean(xg, axis=(2, 3, 4), keepdims=True)
    var = jnp.mean((xg - mean) ** 2, axis=(2, 3, 4), keepdims=True)
    xn = ((xg - mean) / jnp.sqrt(var + EPS)).reshape(N, C, H, W)
    xn = xn * gamma.reshape(1, C, 1, 1) + beta.reshape(1, C, 1, 1)
    a = xn * jax.nn.sigmoid(xn)
    y = jax.lax.conv_general_dilated(
        a, w_oihw, window_strides=(1, 1), padding="SAME",
        dimension_numbers=("NCHW", "OIHW", "NCHW"))
    y = y + b.reshape(1, C, 1, 1)
    return x_nchw + y


if __name__ == "__main__":
    num_groups, channels, H, W, N = 2, 4, 16, 16, 2

    key = jax.random.PRNGKey(0)
    kx, kw, kb, kg, kbt = jax.random.split(key, 5)
    x = jax.random.normal(kx, (N, channels, H, W), jnp.float32)
    w = jax.random.normal(kw, (channels, channels, 3, 3), jnp.float32) * 0.1
    b = jax.random.normal(kb, (channels,), jnp.float32) * 0.1
    gamma = 1.0 + 0.1 * jax.random.normal(kg, (channels,), jnp.float32)
    beta = 0.1 * jax.random.normal(kbt, (channels,), jnp.float32)

    ref = rc_reference(x, gamma, beta, w, b, num_groups=num_groups)

    # row_tile=8 exercises the multi-tile halo path; None lets the picker choose.
    for row_tile in (8, None):
        out = rc_forward(x, gamma, beta, w, b, num_groups=num_groups,
                         row_tile=row_tile)
        out = jax.block_until_ready(out)
        assert out.shape == x.shape and out.dtype == jnp.float32
        max_err = float(jnp.max(jnp.abs(out - ref)))
        # bf16 matmul operands, f32 accumulation -> relaxed tolerance.
        assert jnp.allclose(out, ref, atol=5e-2, rtol=5e-2), (
            f"row_tile={row_tile} max_err={max_err}")

    print("KERNEL_OK")
</pallas_src>

<mosaic_0001>
module attributes {stable_mosaic.version = 11 : i64} {
  func.func @_rc_conv_kernel(%arg0: i32, %arg1: i32, %arg2: memref<1x1x10x18x4xf32, #tpu.memory_space<vmem>>, %arg3: memref<1x8x16x4xf32, #tpu.memory_space<vmem>>, %arg4: memref<1x1x4xf32, #tpu.memory_space<vmem>>, %arg5: memref<1x1x4xf32, #tpu.memory_space<vmem>>, %arg6: memref<36x4xbf16, #tpu.memory_space<vmem>>, %arg7: memref<1x1x4xf32, #tpu.memory_space<vmem>>, %arg8: memref<1x8x16x4xf32, #tpu.memory_space<vmem>>, %arg9: memref<10x18x4xf32, #tpu.memory_space<vmem>>, %arg10: memref<8x16x36xbf16, #tpu.memory_space<vmem>>) attributes {dimension_semantics = [#tpu.dimension_semantics<parallel>, #tpu.dimension_semantics<parallel>], iteration_bounds = array<i64: 2, 2>, scalar_prefetch = 0 : i64, scratch_operands = 2 : i64, tpu.core_type = #tpu.core_type<tc>, window_params = [{transform_indices = @transform_0, window_bounds = array<i64: 1, 1, 10, 18, 4>}, {transform_indices = @transform_1, window_bounds = array<i64: 1, 8, 16, 4>}, {transform_indices = @transform_2, window_bounds = array<i64: 1, 1, 4>}, {transform_indices = @transform_3, window_bounds = array<i64: 1, 1, 4>}, {pipeline_mode = #tpu.pipeline_mode<synchronous>, transform_indices = @transform_4, window_bounds = array<i64: 36, 4>}, {pipeline_mode = #tpu.pipeline_mode<synchronous>, transform_indices = @transform_5, window_bounds = array<i64: 1, 1, 4>}, {transform_indices = @transform_6, window_bounds = array<i64: 1, 8, 16, 4>}]} {
    %c0 = arith.constant 0 : index
    %c0_0 = arith.constant 0 : index
    %c0_1 = arith.constant 0 : index
    %c0_2 = arith.constant 0 : index
    %c0_3 = arith.constant 0 : index
    %0 = vector.load %arg2[%c0, %c0_0, %c0_1, %c0_2, %c0_3] : memref<1x1x10x18x4xf32, #tpu.memory_space<vmem>>, vector<1x1x10x18x4xf32>
    %1 = vector.shape_cast %0 : vector<1x1x10x18x4xf32> to vector<10x18x4xf32>
    %c0_4 = arith.constant 0 : index
    %c0_5 = arith.constant 0 : index
    %c0_6 = arith.constant 0 : index
    %2 = vector.load %arg4[%c0_4, %c0_5, %c0_6] : memref<1x1x4xf32, #tpu.memory_space<vmem>>, vector<1x1x4xf32>
    %3 = vector.shape_cast %2 : vector<1x1x4xf32> to vector<1x4xf32>
    %4 = vector.shape_cast %3 : vector<1x4xf32> to vector<1x1x4xf32>
    %5 = vector.broadcast %4 : vector<1x1x4xf32> to vector<10x18x4xf32>
    %6 = arith.mulf %1, %5 : vector<10x18x4xf32>
    %c0_7 = arith.constant 0 : index
    %c0_8 = arith.constant 0 : index
    %c0_9 = arith.constant 0 : index
    %7 = vector.load %arg5[%c0_7, %c0_8, %c0_9] : memref<1x1x4xf32, #tpu.memory_space<vmem>>, vector<1x1x4xf32>
    %8 = vector.shape_cast %7 : vector<1x1x4xf32> to vector<1x4xf32>
    %9 = vector.shape_cast %8 : vector<1x4xf32> to vector<1x1x4xf32>
    %10 = vector.broadcast %9 : vector<1x1x4xf32> to vector<10x18x4xf32>
    %11 = arith.addf %6, %10 : vector<10x18x4xf32>
    %12 = arith.negf %11 : vector<10x18x4xf32>
    %13 = math.exp %12 : vector<10x18x4xf32>
    %cst = arith.constant 1.000000e+00 : f32
    %14 = vector.broadcast %cst : f32 to vector<10x18x4xf32>
    %15 = arith.addf %14, %13 : vector<10x18x4xf32>
    %16 = arith.divf %14, %15 : vector<10x18x4xf32>
    %17 = arith.mulf %11, %16 : vector<10x18x4xf32>
    %18 = tpu.iota {dimensions = array<i32: 0>} : vector<10x18x1xi32>
    %c8_i32 = arith.constant 8 : i32
    %19 = arith.muli %arg1, %c8_i32 : i32
    %c1_i32 = arith.constant 1 : i32
    %20 = arith.subi %19, %c1_i32 : i32
    %21 = vector.broadcast %20 : i32 to vector<10x18x1xi32>
    %22 = arith.addi %18, %21 : vector<10x18x1xi32>
    %23 = tpu.iota {dimensions = array<i32: 1>} : vector<10x18x1xi32>
    %c0_i32 = arith.constant 0 : i32
    %24 = vector.broadcast %c0_i32 : i32 to vector<10x18x1xi32>
    %25 = arith.cmpi sge, %22, %24 : vector<10x18x1xi32>
    %c16_i32 = arith.constant 16 : i32
    %26 = vector.broadcast %c16_i32 : i32 to vector<10x18x1xi32>
    %27 = arith.cmpi slt, %22, %26 : vector<10x18x1xi32>
    %28 = arith.andi %25, %27 : vector<10x18x1xi1>
    %c1_i32_10 = arith.constant 1 : i32
    %29 = vector.broadcast %c1_i32_10 : i32 to vector<10x18x1xi32>
    %30 = arith.cmpi sge, %23, %29 : vector<10x18x1xi32>
    %31 = arith.andi %28, %30 : vector<10x18x1xi1>
    %c16_i32_11 = arith.constant 16 : i32
    %32 = vector.broadcast %c16_i32_11 : i32 to vector<10x18x1xi32>
    %33 = arith.cmpi sle, %23, %32 : vector<10x18x1xi32>
    %34 = arith.andi %31, %33 : vector<10x18x1xi1>
    %cst_12 = arith.constant 0.000000e+00 : f32
    %35 = vector.shape_cast %34 : vector<10x18x1xi1> to vector<10x18x1xi1>
    %36 = vector.broadcast %35 : vector<10x18x1xi1> to vector<10x18x4xi1>
    %37 = vector.broadcast %cst_12 : f32 to vector<10x18x4xf32>
    %38 = arith.select %36, %17, %37 : vector<10x18x4xi1>, vector<10x18x4xf32>
    %c0_13 = arith.constant 0 : index
    %c0_14 = arith.constant 0 : index
    %c0_15 = arith.constant 0 : index
    %39 = vector.load %arg9[%c0_13, %c0_14, %c0_15] : memref<10x18x4xf32, #tpu.memory_space<vmem>>, vector<10x18x4xf32>
    tpu.vector_store %arg9[%c0_13, %c0_14, %c0_15], %38 {strides = array<i32>} : memref<10x18x4xf32, #tpu.memory_space<vmem>>, vector<10x18x4xf32>,
    %c0_16 = arith.constant 0 : index
    %c0_17 = arith.constant 0 : index
    %c0_18 = arith.constant 0 : index
    %40 = vector.load %arg9[%c0_16, %c0_17, %c0_18] : memref<10x18x4xf32, #tpu.memory_space<vmem>>, vector<8x16x4xf32>
    %41 = arith.truncf %40 : vector<8x16x4xf32> to vector<8x16x4xbf16>
    %c0_19 = arith.constant 0 : index
    %c0_20 = arith.constant 0 : index
    %c0_21 = arith.constant 0 : index
    %42 = vector.load %arg10[%c0_19, %c0_20, %c0_21] : memref<8x16x36xbf16, #tpu.memory_space<vmem>>, vector<8x16x4xbf16>
    tpu.vector_store %arg10[%c0_19, %c0_20, %c0_21], %41 {strides = array<i32>} : memref<8x16x36xbf16, #tpu.memory_space<vmem>>, vector<8x16x4xbf16>,
    %c0_22 = arith.constant 0 : index
    %c1 = arith.constant 1 : index
    %c0_23 = arith.constant 0 : index
    %43 = vector.load %arg9[%c0_22, %c1, %c0_23] : memref<10x18x4xf32, #tpu.memory_space<vmem>>, vector<8x16x4xf32>
    %44 = arith.truncf %43 : vector<8x16x4xf32> to vector<8x16x4xbf16>
    %c0_24 = arith.constant 0 : index
    %c0_25 = arith.constant 0 : index
    %c4 = arith.constant 4 : index
    %45 = vector.load %arg10[%c0_24, %c0_25, %c4] : memref<8x16x36xbf16, #tpu.memory_space<vmem>>, vector<8x16x4xbf16>
    tpu.vector_store %arg10[%c0_24, %c0_25, %c4], %44 {strides = array<i32>} : memref<8x16x36xbf16, #tpu.memory_space<vmem>>, vector<8x16x4xbf16>,
    %c0_26 = arith.constant 0 : index
    %c2 = arith.constant 2 : index
    %c0_27 = arith.constant 0 : index
    %46 = vector.load %arg9[%c0_26, %c2, %c0_27] : memref<10x18x4xf32, #tpu.memory_space<vmem>>, vector<8x16x4xf32>
    %47 = arith.truncf %46 : vector<8x16x4xf32> to vector<8x16x4xbf16>
    %c0_28 = arith.constant 0 : index
    %c0_29 = arith.constant 0 : index
    %c8 = arith.constant 8 : index
    %48 = vector.load %arg10[%c0_28, %c0_29, %c8] : memref<8x16x36xbf16, #tpu.memory_space<vmem>>, vector<8x16x4xbf16>
    tpu.vector_store %arg10[%c0_28, %c0_29, %c8], %47 {strides = array<i32>} : memref<8x16x36xbf16, #tpu.memory_space<vmem>>, vector<8x16x4xbf16>,
    %c1_30 = arith.constant 1 : index
    %c0_31 = arith.constant 0 : index
    %c0_32 = arith.constant 0 : index
    %49 = vector.load %arg9[%c1_30, %c0_31, %c0_32] : memref<10x18x4xf32, #tpu.memory_space<vmem>>, vector<8x16x4xf32>
    %50 = arith.truncf %49 : vector<8x16x4xf32> to vector<8x16x4xbf16>
    %c0_33 = arith.constant 0 : index
    %c0_34 = arith.constant 0 : index
    %c12 = arith.constant 12 : index
    %51 = vector.load %arg10[%c0_33, %c0_34, %c12] : memref<8x16x36xbf16, #tpu.memory_space<vmem>>, vector<8x16x4xbf16>
    tpu.vector_store %arg10[%c0_33, %c0_34, %c12], %50 {strides = array<i32>} : memref<8x16x36xbf16, #tpu.memory_space<vmem>>, vector<8x16x4xbf16>,
    %c1_35 = arith.constant 1 : index
    %c1_36 = arith.constant 1 : index
    %c0_37 = arith.constant 0 : index
    %52 = vector.load %arg9[%c1_35, %c1_36, %c0_37] : memref<10x18x4xf32, #tpu.memory_space<vmem>>, vector<8x16x4xf32>
    %53 = arith.truncf %52 : vector<8x16x4xf32> to vector<8x16x4xbf16>
    %c0_38 = arith.constant 0 : index
    %c0_39 = arith.constant 0 : index
    %c16 = arith.constant 16 : index
    %54 = vector.load %arg10[%c0_38, %c0_39, %c16] : memref<8x16x36xbf16, #tpu.memory_space<vmem>>, vector<8x16x4xbf16>
    tpu.vector_store %arg10[%c0_38, %c0_39, %c16], %53 {strides = array<i32>} : memref<8x16x36xbf16, #tpu.memory_space<vmem>>, vector<8x16x4xbf16>,
    %c1_40 = arith.constant 1 : index
    %c2_41 = arith.constant 2 : index
    %c0_42 = arith.constant 0 : index
    %55 = vector.load %arg9[%c1_40, %c2_41, %c0_42] : memref<10x18x4xf32, #tpu.memory_space<vmem>>, vector<8x16x4xf32>
    %56 = arith.truncf %55 : vector<8x16x4xf32> to vector<8x16x4xbf16>
    %c0_43 = arith.constant 0 : index
    %c0_44 = arith.constant 0 : index
    %c20 = arith.constant 20 : index
    %57 = vector.load %arg10[%c0_43, %c0_44, %c20] : memref<8x16x36xbf16, #tpu.memory_space<vmem>>, vector<8x16x4xbf16>
    tpu.vector_store %arg10[%c0_43, %c0_44, %c20], %56 {strides = array<i32>} : memref<8x16x36xbf16, #tpu.memory_space<vmem>>, vector<8x16x4xbf16>,
    %c2_45 = arith.constant 2 : index
    %c0_46 = arith.constant 0 : index
    %c0_47 = arith.constant 0 : index
    %58 = vector.load %arg9[%c2_45, %c0_46, %c0_47] : memref<10x18x4xf32, #tpu.memory_space<vmem>>, vector<8x16x4xf32>
    %59 = arith.truncf %58 : vector<8x16x4xf32> to vector<8x16x4xbf16>
    %c0_48 = arith.constant 0 : index
    %c0_49 = arith.constant 0 : index
    %c24 = arith.constant 24 : index
    %60 = vector.load %arg10[%c0_48, %c0_49, %c24] : memref<8x16x36xbf16, #tpu.memory_space<vmem>>, vector<8x16x4xbf16>
    tpu.vector_store %arg10[%c0_48, %c0_49, %c24], %59 {strides = array<i32>} : memref<8x16x36xbf16, #tpu.memory_space<vmem>>, vector<8x16x4xbf16>,
    %c2_50 = arith.constant 2 : index
    %c1_51 = arith.constant 1 : index
    %c0_52 = arith.constant 0 : index
    %61 = vector.load %arg9[%c2_50, %c1_51, %c0_52] : memref<10x18x4xf32, #tpu.memory_space<vmem>>, vector<8x16x4xf32>
    %62 = arith.truncf %61 : vector<8x16x4xf32> to vector<8x16x4xbf16>
    %c0_53 = arith.constant 0 : index
    %c0_54 = arith.constant 0 : index
    %c28 = arith.constant 28 : index
    %63 = vector.load %arg10[%c0_53, %c0_54, %c28] : memref<8x16x36xbf16, #tpu.memory_space<vmem>>, vector<8x16x4xbf16>
    tpu.vector_store %arg10[%c0_53, %c0_54, %c28], %62 {strides = array<i32>} : memref<8x16x36xbf16, #tpu.memory_space<vmem>>, vector<8x16x4xbf16>,
    %c2_55 = arith.constant 2 : index
    %c2_56 = arith.constant 2 : index
    %c0_57 = arith.constant 0 : index
    %64 = vector.load %arg9[%c2_55, %c2_56, %c0_57] : memref<10x18x4xf32, #tpu.memory_space<vmem>>, vector<8x16x4xf32>
    %65 = arith.truncf %64 : vector<8x16x4xf32> to vector<8x16x4xbf16>
    %c0_58 = arith.constant 0 : index
    %c0_59 = arith.constant 0 : index
    %c32 = arith.constant 32 : index
    %66 = vector.load %arg10[%c0_58, %c0_59, %c32] : memref<8x16x36xbf16, #tpu.memory_space<vmem>>, vector<8x16x4xbf16>
    tpu.vector_store %arg10[%c0_58, %c0_59, %c32], %65 {strides = array<i32>} : memref<8x16x36xbf16, #tpu.memory_space<vmem>>, vector<8x16x4xbf16>,
    %c0_60 = arith.constant 0 : index
    %c0_61 = arith.constant 0 : index
    %c0_62 = arith.constant 0 : index
    %67 = vector.load %arg10[%c0_60, %c0_61, %c0_62] : memref<8x16x36xbf16, #tpu.memory_space<vmem>>, vector<8x16x36xbf16>
    %68 = vector.shape_cast %67 : vector<8x16x36xbf16> to vector<128x36xbf16>
    %c0_63 = arith.constant 0 : index
    %c0_64 = arith.constant 0 : index
    %69 = vector.load %arg6[%c0_63, %c0_64] : memref<36x4xbf16, #tpu.memory_space<vmem>>, vector<36x4xbf16>
    %cst_65 = arith.constant dense<0.000000e+00> : vector<128x4xf32>
    %70 = tpu.matmul %68, %69, %cst_65 {dimension_numbers = #tpu.dot_dimension_numbers<[1], [0], [0], [1], [0, 0, 1, 1], [], []>} : vector<128x36xbf16>, vector<36x4xbf16>, vector<128x4xf32> -> vector<128x4xf32>
    %71 = vector.shape_cast %70 : vector<128x4xf32> to vector<8x16x4xf32>
    %c0_66 = arith.constant 0 : index
    %c0_67 = arith.constant 0 : index
    %c0_68 = arith.constant 0 : index
    %72 = vector.load %arg7[%c0_66, %c0_67, %c0_68] : memref<1x1x4xf32, #tpu.memory_space<vmem>>, vector<1x1x4xf32>
    %73 = vector.shape_cast %72 : vector<1x1x4xf32> to vector<1x4xf32>
    %74 = vector.shape_cast %73 : vector<1x4xf32> to vector<1x1x4xf32>
    %75 = vector.broadcast %74 : vector<1x1x4xf32> to vector<8x16x4xf32>
    %76 = arith.addf %71, %75 : vector<8x16x4xf32>
    %c0_69 = arith.constant 0 : index
    %c0_70 = arith.constant 0 : index
    %c0_71 = arith.constant 0 : index
    %c0_72 = arith.constant 0 : index
    %77 = vector.load %arg3[%c0_69, %c0_70, %c0_71, %c0_72] : memref<1x8x16x4xf32, #tpu.memory_space<vmem>>, vector<1x8x16x4xf32>
    %78 = vector.shape_cast %77 : vector<1x8x16x4xf32> to vector<8x16x4xf32>
    %79 = arith.addf %78, %76 : vector<8x16x4xf32>
    %c0_73 = arith.constant 0 : index
    %c0_74 = arith.constant 0 : index
    %c0_75 = arith.constant 0 : index
    %c0_76 = arith.constant 0 : index
    %80 = vector.load %arg8[%c0_73, %c0_74, %c0_75, %c0_76] : memref<1x8x16x4xf32, #tpu.memory_space<vmem>>, vector<1x8x16x4xf32>
    %81 = vector.shape_cast %80 : vector<1x8x16x4xf32> to vector<8x16x4xf32>
    %82 = vector.shape_cast %79 : vector<8x16x4xf32> to vector<1x8x16x4xf32>
    tpu.vector_store %arg8[%c0_73, %c0_74, %c0_75, %c0_76], %82 {strides = array<i32>} : memref<1x8x16x4xf32, #tpu.memory_space<vmem>>, vector<1x8x16x4xf32>,
    return
  }
  func.func @transform_0(%arg0: i32, %arg1: i32) -> (i32, i32, i32, i32, i32) {
    %c0_i32 = arith.constant 0 : i32
    %c0_i32_0 = arith.constant 0 : i32
    %c0_i32_1 = arith.constant 0 : i32
    %c0_i32_2 = arith.constant 0 : i32
    return %arg0, %arg1, %c0_i32, %c0_i32_0, %c0_i32_1 : i32, i32, i32, i32, i32
  }
  func.func @transform_1(%arg0: i32, %arg1: i32) -> (i32, i32, i32, i32) {
    %c0_i32 = arith.constant 0 : i32
    %c0_i32_0 = arith.constant 0 : i32
    %c0_i32_1 = arith.constant 0 : i32
    return %arg0, %arg1, %c0_i32, %c0_i32_0 : i32, i32, i32, i32
  }
  func.func @transform_2(%arg0: i32, %arg1: i32) -> (i32, i32, i32) {
    %c0_i32 = arith.constant 0 : i32
    %c0_i32_0 = arith.constant 0 : i32
    %c0_i32_1 = arith.constant 0 : i32
    return %arg0, %c0_i32, %c0_i32_0 : i32, i32, i32
  }
  func.func @transform_3(%arg0: i32, %arg1: i32) -> (i32, i32, i32) {
    %c0_i32 = arith.constant 0 : i32
    %c0_i32_0 = arith.constant 0 : i32
    %c0_i32_1 = arith.constant 0 : i32
    return %arg0, %c0_i32, %c0_i32_0 : i32, i32, i32
  }
  func.func @transform_4(%arg0: i32, %arg1: i32) -> (i32, i32) {
    %c0_i32 = arith.constant 0 : i32
    %c0_i32_0 = arith.constant 0 : i32
    %c0_i32_1 = arith.constant 0 : i32
    return %c0_i32, %c0_i32_0 : i32, i32
  }
  func.func @transform_5(%arg0: i32, %arg1: i32) -> (i32, i32, i32) {
    %c0_i32 = arith.constant 0 : i32
    %c0_i32_0 = arith.constant 0 : i32
    %c0_i32_1 = arith.constant 0 : i32
    %c0_i32_2 = arith.constant 0 : i32
    return %c0_i32, %c0_i32_0, %c0_i32_1 : i32, i32, i32
  }
  func.func @transform_6(%arg0: i32, %arg1: i32) -> (i32, i32, i32, i32) {
    %c0_i32 = arith.constant 0 : i32
    %c0_i32_0 = arith.constant 0 : i32
    %c0_i32_1 = arith.constant 0 : i32
    return %arg0, %arg1, %c0_i32, %c0_i32_0 : i32, i32, i32, i32
  }
}

</mosaic_0001>

<bundles_post_ra>
// kernel: tpu_custom_call.1
= control target key start
LH: loop header
LB: loop body
LE: loop exit
PB: predicated region body
PF: predicated region fallthrough
CT: control target
= control target key end

     0   :  { %s3112_s21 = smov 0   ;;  %s3114_s22 = smov 0   ;;  %s4298_s0 = inlined_call_operand.vmem [shape: f32[2,2,10,18,4], index: 0, kind: input, shape index: {}]   ;;  %s4299_s1 = inlined_call_operand.vmem [shape: f32[2,16,16,4], index: 1, kind: input, shape index: {}]   ;;  %s4300_s2 = inlined_call_operand.vmem [shape: f32[2,1,4], index: 2, kind: input, shape index: {}]   ;;  %s4301_s3 = inlined_call_operand.vmem [shape: f32[2,1,4], index: 3, kind: input, shape index: {}]   ;;  %s4302_s4 = inlined_call_operand.vmem [shape: bf16[36,4], index: 4, kind: input, shape index: {}]   ;;  %s4303_s5 = inlined_call_operand.vmem [shape: f32[1,1,4], index: 5, kind: input, shape index: {}]   ;;  %s4304_s6 = inlined_call_operand.vmem [shape: f32[2,16,16,4], index: 6, kind: output, shape index: {}]  }
   0x1   :  { %s3116_s23 = smov 0   ;;  %s3118_s24 = smov 0  }
   0x2   :  { %s3120_s25 = smov 0  }
   0x3 LB: > { %s25_s26 = sadd.s32 1, %s3059_s23  ;;  %s28_s27 = sadd.s32 1, %s3063_s24  ;;  %s3067_s25 = sphi %s3120_s25, %s16_s25   ;;  %s3063_s24 = sphi %s3118_s24, %s4358_s24   ;;  %s3059_s23 = sphi %s3116_s23, %s4357_s23   ;;  %s3055_s22 = sphi %s3114_s22, %s4356_s22   ;;  %s3051_s21 = sphi %s3112_s21, %s4355_s21  }
   0x4   : > { %p26_p0 = scmp.ge.s32.totalorder %s25_s26, 2  ;;  %p2453_p1 = scmp.ge.s32.totalorder %s3067_s25, 1 }
   0x5   : > { %p266_p2 = scmp.lt.s32.totalorder %s3067_s25, 5 }
   0x6   : > { %s4360_s26 = smov (%p26_p0, %s25_s26), 0  ;;  %s4362_s27 = smov (!%p26_p0, %s28_s27), %s3063_s24 }
   0x7   : > { %p267_p3 = pnand %p2453_p1, %p266_p2  ;;  %p30_p4 = scmp.ge.s32.totalorder %s4362_s27, 2 }
   0x8   : > { %p321_p5 = scmp.lt.s32.totalorder (!%p267_p3), %s3055_s22, 1  ;;  %p323_p6 = scmp.lt.s32.totalorder (!%p267_p3), %s3051_s21, 1 }
   0x9   : > { %s4364_s27 = smov (%p30_p4, %s4362_s27), 0  ;;  %270 = sbr.rel (%p267_p3) target bundleno = 654 (0x28e), region = 44 }
   0xa   : > { %s3248_s18 = sshll.u32 (!%p267_p3), %s3051_s21, 3  ;;  %s3069_s20 = smov (!%p267_p3), 4  }
   0xb   : > { %s2496_s19 = sadd.s32 (!%p267_p3), 4294967295, %s3248_s18  ;;  %s3074_s7 = smov (!%p267_p3), 24  }
   0xc   : > { %s3075_s8 = smov (!%p267_p3), 28   ;;  %p333_p7 = scmp.lt.s32.totalorder (!%p267_p3), %s3248_s18, 15 }
   0xe   : > { %s4366_s22 = smov (!%p321_p5, %s3055_s22), 1  ;;  %v685_v62 = vlaneseq  ;;  %vm875_vm6 = vcmask 31744   ;;  %vm878_vm12 = vcmask 25600   ;;  %s4368_s18 = smov (!%p333_p7, %s3248_s18), 15 }
   0xf   : > { %s324_s28 = scalar_select %p323_p6, %s3051_s21, 1 }
  0x10   : > { %s2849_s29 = smul.u32 60, %s4366_s22  ;;  %s343_s9 = scalar_lea.vmem %s4300_s2, %s4366_s22 }
  0x11   : > { %s2848_s30 = smul.u32 30, %s324_s28  ;;  %s346_s12 = scalar_lea.vmem %s4301_s3, %s4366_s22  ;;  %v3157_v0 = vld [vmem:[%s343_s9] ss:$0 sm:$0xff] }
  0x12   : > { %v3164_v1 = vld [vmem:[%s346_s12] ss:$0 sm:$0xff]  ;;  %s3070_s21 = smov 8   ;;  %s3071_s28 = smov 12  }
  0x13   : > { %s327_s13 = sadd.s32 %s2849_s29, %s2848_s30  ;;  %s3072_s29 = smov 16  }
  0x14   : > { %s2454_s14 = sshll.u32 %s327_s13, 3  ;;  %s3073_s30 = smov 20  }
  0x15   : > { %s3162_s17 = scalar_lea.vmem %s4298_s0, %s2454_s14  ;;  %s3076_s9 = smov 32  }
  0x16   : > { %v371_v2 = vld [vmem:[%s3162_s17 + $0x60] sm:$0xff]  ;;  %v372_v3 = vld [vmem:[%s3162_s17 + $0x68] sm:$0xff]  ;;  %v373_v9 = vld [vmem:[%s3162_s17 + $0x70] sm:$0x3]  ;;  %s2456_s16 = sshll.u32 %s4368_s18, 1 }
  0x17   : > { %v359_v4 = vld [vmem:[%s3162_s17] sm:$0xff]  ;;  %v408_v5 = vmul.f32 %v3157_v0, %v371_v2  ;;  %v409_v6 = vmul.f32 %v3157_v0, %v372_v3  ;;  %v360_v7 = vld [vmem:[%s3162_s17 + $0x8] sm:$0xff]  ;;  %v410_v11 = vmul.f32 %v3157_v0, %v373_v9  ;;  %v361_v12 = vld [vmem:[%s3162_s17 + $0x10] sm:$0x3]  ;;  %v3268_v9 = vshrl.u32 %v685_v62, 7 }
  0x18   : > { %v396_v8 = vmul.f32 %v3157_v0, %v359_v4  ;;  %v397_v10 = vmul.f32 %v3157_v0, %v360_v7  ;;  %v363_v13 = vld [vmem:[%s3162_s17 + $0x20] sm:$0xff]  ;;  %v398_v17 = vmul.f32 %v3157_v0, %v361_v12  ;;  %v364_v18 = vld [vmem:[%s3162_s17 + $0x28] sm:$0x3]  ;;  %v362_v23 = vld [vmem:[%s3162_s17 + $0x18] sm:$0xff] }
  0x19   : > { %v3179_v14 = vadd.f32 %v3164_v1, %v408_v5  ;;  %v3182_v15 = vadd.f32 %v3164_v1, %v409_v6  ;;  %v3193_v20 = vadd.f32 %v3164_v1, %v410_v11  ;;  %v400_v21 = vmul.f32 %v3157_v0, %v363_v13  ;;  %v375_v24 = vld [vmem:[%s3162_s17 + $0x80] sm:$0xff]  ;;  %v376_v25 = vld [vmem:[%s3162_s17 + $0x88] sm:$0x3]  ;;  %v374_v33 = vld [vmem:[%s3162_s17 + $0x78] sm:$0xff] }
  0x1a   : > { %v3185_v16 = vadd.f32 %v3164_v1, %v396_v8  ;;  %v3190_v19 = vadd.f32 %v3164_v1, %v397_v10  ;;  %v401_v22 = vmul.f32 %v3157_v0, %v364_v18  ;;  %v3204_v29 = vadd.f32 %v3164_v1, %v398_v17  ;;  %v366_v37 = vld [vmem:[%s3162_s17 + $0x38] sm:$0xff]  ;;  %v365_v47 = vld [vmem:[%s3162_s17 + $0x30] sm:$0xff] }
  0x1b   : > { %v2477_v26 = vmul.f32 -1.442695, %v3179_v14  ;;  %v2478_v27 = vmul.f32 -1.442695, %v3182_v15  ;;  %v3208_v31 = vadd.f32 %v3164_v1, %v400_v21  ;;  %v2479_v34 = vmul.f32 -1.442695, %v3193_v20 }
  0x1c   : > { %v2465_v28 = vmul.f32 -1.442695, %v3185_v16  ;;  %v2466_v30 = vmul.f32 -1.442695, %v3190_v19  ;;  %v3211_v32 = vadd.f32 %v3164_v1, %v401_v22  ;;  %v399_v35 = vmul.f32 %v3157_v0, %v362_v23  ;;  %v378_v48 = vld [vmem:[%s3162_s17 + $0x98] sm:$0xff]  ;;  %v377_v53 = vld [vmem:[%s3162_s17 + $0x90] sm:$0xff] }
  0x1d   : > { %2909 = vpow2.f32 %v2477_v26  ;;  %v412_v36 = vmul.f32 %v3157_v0, %v375_v24  ;;  %v2467_v38 = vmul.f32 -1.442695, %v3204_v29  ;;  %v2469_v39 = vmul.f32 -1.442695, %v3208_v31  ;;  %v367_v23 = vld [vmem:[%s3162_s17 + $0x40] sm:$0x3] }
  0x1e   : > { %2911 = vpow2.f32 %v2478_v27  ;;  %v413_v40 = vmul.f32 %v3157_v0, %v376_v25  ;;  %v3222_v41 = vadd.f32 %v3164_v1, %v399_v35  ;;  %v411_v43 = vmul.f32 %v3157_v0, %v374_v33 }
  0x1f   : > { %2913 = vpow2.f32 %v2465_v28  ;;  %v3225_v42 = vadd.f32 %v3164_v1, %v412_v36  ;;  %v2470_v44 = vmul.f32 -1.442695, %v3211_v32  ;;  %v403_v46 = vmul.f32 %v3157_v0, %v366_v37  ;;  %v379_v28 = vld [vmem:[%s3162_s17 + $0xa0] sm:$0x3]  ;;  %v369_v36 = vld [vmem:[%s3162_s17 + $0x50] sm:$0xff] }
  0x20   : > { %2915 = vpow2.f32 %v2466_v30  ;;  %v3230_v45 = vadd.f32 %v3164_v1, %v413_v40  ;;  %v2468_v49 = vmul.f32 -1.442695, %v3222_v41  ;;  %v3237_v50 = vadd.f32 %v3164_v1, %v411_v43  ;;  %v368_v40 = vld [vmem:[%s3162_s17 + $0x48] sm:$0xff] }
  0x21   : > { %2917 = vpow2.f32 %v2479_v34  ;;  %v2481_v51 = vmul.f32 -1.442695, %v3225_v42  ;;  %v3241_v52 = vadd.f32 %v3164_v1, %v403_v46  ;;  %v402_v55 = vmul.f32 %v3157_v0, %v365_v47  ;;  %v381_v47 = vld [vmem:[%s3162_s17 + $0xb0] sm:$0xff] }
  0x22   : > { %2919 = vpow2.f32 %v2467_v38  ;;  %v2482_v54 = vmul.f32 -1.442695, %v3230_v45  ;;  %v415_v56 = vmul.f32 %v3157_v0, %v378_v48  ;;  %v2480_v57 = vmul.f32 -1.442695, %v3237_v50 }
  0x23   : > { %2921 = vpow2.f32 %v2469_v39  ;;  %v2472_v58 = vmul.f32 -1.442695, %v3241_v52  ;;  %v3253_v59 = vadd.f32 %v3164_v1, %v402_v55  ;;  %v414_v61 = vmul.f32 %v3157_v0, %v377_v53  ;;  %v380_v53 = vld [vmem:[%s3162_s17 + $0xa8] sm:$0xff] }
  0x24   : > { %2923 = vpow2.f32 %v2470_v44  ;;  %v3256_v60 = vadd.f32 %v3164_v1, %v415_v56  ;;  %v3266_v6 = vstv %s2496_s19  ;;  %v3272_v18 = vadd.s32 16, %v3268_v9 }
  0x25   : > { %2925 = vpow2.f32 %v2468_v49  ;;  %v2471_v63 = vmul.f32 -1.442695, %v3253_v59  ;;  %v3263_v3 = vadd.f32 %v3164_v1, %v414_v61  ;;  %v679_v13 = vadd.s32 4, %v3266_v6 }
  0x26   : > { %2927 = vpow2.f32 %v2481_v51  ;;  %v2484_v2 = vmul.f32 -1.442695, %v3256_v60  ;;  %vm689_vm0 = vcmp.ge.s32.totalorder %v3266_v6, 0  ;;  %vm699_vm1 = vcmp.lt.s32.totalorder %v3266_v6, 16 }
  0x27   : > { %2929 = vpow2.f32 %v2482_v54  ;;  %v2483_v4 = vmul.f32 -1.442695, %v3263_v3  ;;  %vm719_vm2 = vcmp.ge.s32.totalorder %v3268_v9, 1  ;;  %v3279_v26 = vadd.s32 1, %v3266_v6  ;;  %vm3332_vm13 = vmand %vm689_vm0, %vm699_vm1 }
  0x28   : > { %2931 = vpow2.f32 %v2480_v57  ;;  %v3282_v27 = vadd.s32 5, %v3266_v6  ;;  %v3286_v34 = vadd.s32 2, %v3266_v6  ;;  %v3289_v35 = vadd.s32 6, %v3266_v6  ;;  %v370_v57 = vld [vmem:[%s3162_s17 + $0x58] sm:$0x3]  ;;  %vm3363_vm0 = vmand %vm3332_vm13, %vm719_vm2 }
  0x29   : > { %2933 = vpow2.f32 %v2472_v58  ;;  %vm693_vm3 = vcmp.ge.s32.totalorder %v679_v13, 0  ;;  %v404_v39 = vmul.f32 %v3157_v0, %v367_v23  ;;  %vm703_vm4 = vcmp.lt.s32.totalorder %v679_v13, 16 }
  0x2a   : > { %v2910_v5 = vpop.eup %2909  ;;  %2935 = vpow2.f32 %v2471_v63  ;;  %vm754_vm5 = vcmp.le.s32.totalorder %v3272_v18, 16  ;;  %v416_v46 = vmul.f32 %v3157_v0, %v379_v28  ;;  %vm690_vm7 = vcmp.ge.s32.totalorder %v3279_v26, 0  ;;  %vm3316_vm11 = vmand %vm693_vm3, %vm703_vm4 }
  0x2b   : > { %v2912_v7 = vpop.eup %2911  ;;  %v565_v8 = vadd.f32 1.0, %v2910_v5  ;;  %2937 = vpow2.f32 %v2484_v2  ;;  %v406_v51 = vmul.f32 %v3157_v0, %v369_v36  ;;  %vm700_vm8 = vcmp.lt.s32.totalorder %v3279_v26, 16  ;;  %v382_v2 = vld [vmem:[%s3162_s17 + $0xb8] sm:$0x3]  ;;  %vm3345_vm15 = vmand %vm3316_vm11, %vm719_vm2 }
  0x2c   : > { %v2914_v10 = vpop.eup %2913  ;;  %v566_v11 = vadd.f32 1.0, %v2912_v7  ;;  %2939 = vpow2.f32 %v2483_v4  ;;  %v405_v56 = vmul.f32 %v3157_v0, %v368_v40  ;;  %vm694_vm9 = vcmp.ge.s32.totalorder %v3282_v27, 0  ;;  %vm3378_vm1 = vmand %vm3316_vm11, %vm754_vm5 }
  0x2d   : > { %v2916_v12 = vpop.eup %2915  ;;  %2941 = vrcp.f32 %v565_v8  ;;  %v553_v17 = vadd.f32 1.0, %v2914_v10  ;;  %vm704_vm10 = vcmp.lt.s32.totalorder %v3282_v27, 16  ;;  %v3306_v62 = vadd.f32 %v3164_v1, %v404_v39  ;;  %vm3391_vm3 = vmand %vm690_vm7, %vm700_vm8 }
  0x2e   : > { %v2918_v21 = vpop.eup %2917  ;;  %2943 = vrcp.f32 %v566_v11  ;;  %v554_v22 = vadd.f32 1.0, %v2916_v12  ;;  %v418_v63 = vmul.f32 %v3157_v0, %v381_v47  ;;  %v3311_v7 = vadd.f32 %v3164_v1, %v416_v46  ;;  %vm3404_vm4 = vmand %vm3332_vm13, %vm754_vm5 }
  0x2f   : > { %v2920_v24 = vpop.eup %2919  ;;  %2945 = vrcp.f32 %v553_v17  ;;  %v567_v25 = vadd.f32 1.0, %v2918_v21  ;;  %v417_v8 = vmul.f32 %v3157_v0, %v380_v53  ;;  %v3321_v17 = vadd.f32 %v3164_v1, %v406_v51  ;;  %vm3417_vm7 = vmand %vm694_vm9, %vm704_vm10 }
  0x30   : > { %v2922_v30 = vpop.eup %2921  ;;  %2947 = vrcp.f32 %v554_v22  ;;  %v555_v33 = vadd.f32 1.0, %v2920_v24  ;;  %v407_v21 = vmul.f32 %v3157_v0, %v370_v57  ;;  %v3325_v24 = vadd.f32 %v3164_v1, %v405_v56  ;;  %vm3430_vm8 = vmand %vm3391_vm3, %vm754_vm5 }
  0x31   : > { %v2924_v37 = vpop.eup %2923  ;;  %2949 = vrcp.f32 %v567_v25  ;;  %v557_v38 = vadd.f32 1.0, %v2922_v30  ;;  %v419_v13 = vmul.f32 %v3157_v0, %v382_v2  ;;  %vm691_vm14 = vcmp.ge.s32.totalorder %v3286_v34, 0  ;;  %vm3443_vm10 = vmand %vm3391_vm3, %vm719_vm2 }
  0x32   : > { %v2926_v43 = vpop.eup %2925  ;;  %2951 = vrcp.f32 %v555_v33  ;;  %v558_v44 = vadd.f32 1.0, %v2924_v37  ;;  %v2473_v33 = vmul.f32 -1.442695, %v3306_v62  ;;  %v3339_v36 = vadd.f32 %v3164_v1, %v418_v63 }
  0x33   : > { %v2928_v48 = vpop.eup %2927  ;;  %2953 = vrcp.f32 %v557_v38  ;;  %v556_v49 = vadd.f32 1.0, %v2926_v43  ;;  %v2485_v40 = vmul.f32 -1.442695, %v3311_v7  ;;  %v3351_v43 = vadd.f32 %v3164_v1, %v417_v8 }
  0x34   : > { %v2930_v54 = vpop.eup %2929  ;;  %2955 = vrcp.f32 %v558_v44  ;;  %v569_v55 = vadd.f32 1.0, %v2928_v48  ;;  %v2475_v47 = vmul.f32 -1.442695, %v3321_v17  ;;  %v3356_v48 = vadd.f32 %v3164_v1, %v407_v21 }
  0x35   : > { %v2932_v58 = vpop.eup %2931  ;;  %2957 = vrcp.f32 %v556_v49  ;;  %v570_v61 = vadd.f32 1.0, %v2930_v54  ;;  %v3369_v54 = vadd.f32 %v3164_v1, %v419_v13  ;;  %vm701_vm9 = vcmp.lt.s32.totalorder %v3286_v34, 16 }
  0x36   : > { %v2934_v4 = vpop.eup %2933  ;;  %2959 = vrcp.f32 %v569_v55  ;;  %v568_v5 = vadd.f32 1.0, %v2932_v58  ;;  %v2487_v58 = vmul.f32 -1.442695, %v3339_v36  ;;  %v2476_v26 = vmul.f32 -1.442695, %v3356_v48 }
  0x37   : > { %v2936_v10 = vpop.eup %2935  ;;  %2961 = vrcp.f32 %v570_v61  ;;  %v560_v12 = vadd.f32 1.0, %v2934_v4  ;;  %v2486_v4 = vmul.f32 -1.442695, %v3351_v43 }
  0x38   : > { %v2938_v22 = vpop.eup %2937  ;;  %2963 = vrcp.f32 %v568_v5  ;;  %v559_v23 = vadd.f32 1.0, %v2936_v10 }
  0x39   : > { %v2940_v25 = vpop.eup %2939  ;;  %2965 = vrcp.f32 %v560_v12  ;;  %v572_v30 = vadd.f32 1.0, %v2938_v22  ;;  %v2488_v22 = vmul.f32 -1.442695, %v3369_v54 }
  0x3a   : > { %v2942_v37 = vpop.eup %2941  ;;  %2967 = vrcp.f32 %v559_v23  ;;  %v571_v39 = vadd.f32 1.0, %v2940_v25 }
  0x3b   : > { %v2944_v44 = vpop.eup %2943  ;;  %v655_v46 = vmul.f32 %v2942_v37, %v3179_v14  ;;  %2969 = vrcp.f32 %v572_v30  ;;  %v2474_v14 = vmul.f32 -1.442695, %v3325_v24 }
  0x3c   : > { %v2946_v49 = vpop.eup %2945  ;;  %v656_v51 = vmul.f32 %v2944_v44, %v3182_v15  ;;  %2971 = vrcp.f32 %v571_v39 }
  0x3d   : > { %v2948_v55 = vpop.eup %2947  ;;  %v857_v56 = vsel %vm3345_vm15, %v655_v46, 0.0  ;;  %v643_v15 = vmul.f32 %v2946_v49, %v3185_v16  ;;  %2973 = vpow2.f32 %v2473_v33  ;;  %vm705_vm15 = vcmp.lt.s32.totalorder %v3289_v35, 16 }
  0x3e   : > { %v2950_v61 = vpop.eup %2949  ;;  %v858_v63 = vsel %vm3316_vm11, %v656_v51, 0.0  ;;  %889 = vst.msk [vmem:[#allocation2 + $0x60] sm:$0xff] %vm875_vm6, %v857_v56  ;;  %v644_v2 = vmul.f32 %v2948_v55, %v3190_v19  ;;  %2975 = vpow2.f32 %v2485_v40  ;;  %vm695_vm11 = vcmp.ge.s32.totalorder %v3289_v35, 0 }
  0x3f   : > { %v2952_v5 = vpop.eup %2951  ;;  %890 = vst.msk [vmem:[#allocation2 + $0x68] sm:$0xff] %vm875_vm6, %v858_v63  ;;  %v845_v8 = vsel %vm3363_vm0, %v643_v15, 0.0  ;;  %v657_v10 = vmul.f32 %v2950_v61, %v3193_v20  ;;  %2977 = vpow2.f32 %v2475_v47  ;;  %vm3469_vm0 = vmand %vm691_vm14, %vm701_vm9  ;;  %vm987_vm14 = vcmask 27648  }
  0x40   : > { %v2954_v11 = vpop.eup %2953  ;;  %v846_v12 = vsel %vm3332_vm13, %v644_v2, 0.0  ;;  %876 = vst.msk [vmem:[#allocation2] sm:$0xff] %vm875_vm6, %v845_v8  ;;  %v645_v21 = vmul.f32 %v2952_v5, %v3204_v29  ;;  %2979 = vpow2.f32 %v2474_v14  ;;  %vm3456_vm13 = vmand %vm3417_vm7, %vm754_vm5 }
  0x41   : > { %v2956_v23 = vpop.eup %2955  ;;  %877 = vst.msk [vmem:[#allocation2 + $0x8] sm:$0xff] %vm875_vm6, %v846_v12  ;;  %v859_v13 = vsel %vm3378_vm1, %v657_v10, 0.0  ;;  %v647_v25 = vmul.f32 %v2954_v11, %v3208_v31  ;;  %2981 = vpow2.f32 %v2487_v58  ;;  %vm3481_vm1 = vmand %vm3417_vm7, %vm719_vm2 }
  0x42   : > { %v2958_v27 = vpop.eup %2957  ;;  %891 = vst.msk [vmem:[#allocation2 + $0x70] sm:$0x3] %vm878_vm12, %v859_v13  ;;  %v847_v28 = vsel %vm3404_vm4, %v645_v21, 0.0  ;;  %v648_v30 = vmul.f32 %v2956_v23, %v3211_v32  ;;  %2983 = vpow2.f32 %v2486_v4  ;;  %vm3507_vm4 = vmand %vm3469_vm0, %vm719_vm2 }
  0x43   : > { %v2960_v33 = vpop.eup %2959  ;;  %879 = vst.msk [vmem:[#allocation2 + $0x10] sm:$0x3] %vm878_vm12, %v847_v28  ;;  %v849_v37 = vsel %vm3391_vm3, %v647_v25, 0.0  ;;  %v646_v38 = vmul.f32 %v2958_v27, %v3222_v41  ;;  %2985 = vpow2.f32 %v2476_v26  ;;  %vm3493_vm3 = vmand %vm695_vm11, %vm705_vm15 }
  0x44   : > { %v2962_v39 = vpop.eup %2961  ;;  %v850_v40 = vsel %vm3430_vm8, %v648_v30, 0.0  ;;  %881 = vst.msk [vmem:[#allocation2 + $0x20] sm:$0xff] %vm875_vm6, %v849_v37  ;;  %v659_v44 = vmul.f32 %v2960_v33, %v3225_v42  ;;  %2987 = vpow2.f32 %v2488_v22  ;;  %vm3614_vm11 = vmand %vm3493_vm3, %vm754_vm5 }
  0x45   : > { %v2964_v46 = vpop.eup %2963  ;;  %882 = vst.msk [vmem:[#allocation2 + $0x28] sm:$0x3] %vm878_vm12, %v850_v40  ;;  %v848_v47 = vsel %vm3443_vm10, %v646_v38, 0.0  ;;  %v660_v49 = vmul.f32 %v2962_v39, %v3230_v45  ;;  %v915_v34 = vld [vmem:[#allocation2 + $0x60] sm:$0xff]  ;;  %vm3606_vm10 = vmand %vm3469_vm0, %vm754_vm5 }
  0x46   : > { %v2966_v51 = vpop.eup %2965  ;;  %v1012_v53 = vld [vmem:[#allocation2 + $0x61] sm:$0xff]  ;;  %880 = vst.msk [vmem:[#allocation2 + $0x18] sm:$0xff] %vm875_vm6, %v848_v47  ;;  %v861_v14 = vsel %vm3417_vm7, %v659_v44, 0.0  ;;  %v658_v55 = vmul.f32 %v2964_v46, %v3237_v50  ;;  %v3497_v56 = vpack.c.bf16 %v915_v34, %v915_v34  ;;  %vm3528_vm7 = vmand %vm3493_vm3, %vm719_vm2 }
  0x47   : > { %v916_v15 = vld [vmem:[#allocation2 + $0x68] sm:$0xff]  ;;  %v2968_v57 = vpop.eup %2967  ;;  %v2687_v58 = vpack.c.bf16 %v1012_v53, %v1012_v53  ;;  %v862_v61 = vsel %vm3456_vm13, %v660_v49, 0.0  ;;  %893 = vst.msk [vmem:[#allocation2 + $0x80] sm:$0xff] %vm875_vm6, %v861_v14  ;;  %v650_v50 = vmul.f32 %v2966_v51, %v3241_v52  ;;  %v907_v63 = vld [vmem:[#allocation2] sm:$0xff] }
  0x48   : > { %v2970_v2 = vpop.eup %2969  ;;  %v1004_v16 = vld [vmem:[#allocation2 + $0x1] sm:$0xff]  ;;  %894 = vst.msk [vmem:[#allocation2 + $0x88] sm:$0x3] %vm878_vm12, %v862_v61  ;;  %v860_v4 = vsel %vm3481_vm1, %v658_v55, 0.0  ;;  %v649_v5 = vmul.f32 %v2968_v57, %v3253_v59  ;;  %v2663_v52 = vpack.c.bf16 %v907_v63, %v907_v63  ;;  %v3517_v8 = vpack.c.bf16 %v916_v15, %v916_v15 }
  0x49   : > { %996 = vst.msk [vmem:[#allocation3 + $0x20] sm:$0xf] %vm987_vm14, %v3497_v56  ;;  %v2972_v10 = vpop.eup %2971  ;;  %1084 = vrot.lane.b32.xlu1 %v2687_v58, %s3069_s20  ;;  %v2679_v19 = vpack.c.bf16 %v1004_v16, %v1004_v16  ;;  %v1013_v26 = vld [vmem:[#allocation2 + $0x69] sm:$0xff]  ;;  %v852_v11 = vsel %vm3469_vm0, %v650_v50, 0.0  ;;  %v662_v12 = vmul.f32 %v2970_v2, %v3256_v60 }
  0x4a   : > { %892 = vst.msk [vmem:[#allocation2 + $0x78] sm:$0xff] %vm875_vm6, %v860_v4  ;;  %v908_v21 = vld [vmem:[#allocation2 + $0x8] sm:$0xff]  ;;  %v2974_v20 = vpop.eup %2973  ;;  %v2688_v22 = vpack.c.bf16 %v1013_v26, %v1013_v26  ;;  %884 = vst.msk [vmem:[#allocation2 + $0x38] sm:$0xff] %vm875_vm6, %v852_v11  ;;  %v851_v13 = vsel %vm3507_vm4, %v649_v5, 0.0  ;;  %v661_v25 = vmul.f32 %v2972_v10, %v3263_v3 }
  0x4b   : > { %v1005_v23 = vld [vmem:[#allocation2 + $0x9] sm:$0xff]  ;;  %988 = vst.msk [vmem:[#allocation3] sm:$0xf] %vm987_vm14, %v2663_v52  ;;  %997 = vst.msk [vmem:[#allocation3 + $0x24] sm:$0xf] %vm987_vm14, %v3517_v8  ;;  %v2976_v60 = vpop.eup %2975  ;;  %1068 = vrot.lane.b32.xlu0 %v2679_v19, %s3069_s20  ;;  %v1264_v27 = vld [vmem:[#allocation2 + $0x20] sm:$0xff]  ;;  %v2664_v32 = vpack.c.bf16 %v908_v21, %v908_v21 }
  0x4c   : > { %v2680_v29 = vpack.c.bf16 %v1005_v23, %v1005_v23  ;;  %883 = vst.msk [vmem:[#allocation2 + $0x30] sm:$0xff] %vm875_vm6, %v851_v13  ;;  %v864_v28 = vsel %vm3493_vm3, %v662_v12, 0.0  ;;  %v561_v30 = vadd.f32 1.0, %v2974_v20  ;;  %v2978_v31 = vpop.eup %2977  ;;  %v1007_v33 = vld [vmem:[#allocation2 + $0x21] sm:$0xff]  ;;  %v3543_v3 = vpack.c.bf16 %v1264_v27, %v1264_v27  ;;  %v1134_v10 = vld [vmem:[#allocation2 + $0xa] sm:$0xff] }
  0x4d   : > { %896 = vst.msk [vmem:[#allocation2 + $0x98] sm:$0xff] %vm875_vm6, %v864_v28  ;;  %v863_v37 = vsel %vm3528_vm7, %v661_v25, 0.0  ;;  %v573_v38 = vadd.f32 1.0, %v2976_v60  ;;  %v2980_v39 = vpop.eup %2979  ;;  %1086 = vrot.lane.b32.xlu1 %v2688_v22, %s3069_s20  ;;  %v3549_v40 = vpack.c.bf16 %v1007_v33, %v1007_v33  ;;  %v1006_v44 = vld [vmem:[#allocation2 + $0x19] sm:$0xff]  ;;  %v563_v47 = vadd.f32 1.0, %v2978_v31  ;;  %v384_v49 = vld [vmem:[%s3162_s17 + $0xc8] sm:$0xff] }
  0x4e   : > { %v1263_v46 = vld [vmem:[#allocation2 + $0x18] sm:$0xff]  ;;  %895 = vst.msk [vmem:[#allocation2 + $0x90] sm:$0xff] %vm875_vm6, %v863_v37  ;;  %2989 = vrcp.f32 %v561_v30  ;;  %v2982_v42 = vpop.eup %2981  ;;  %v3553_v34 = vpack.c.bf16 %v1006_v44, %v1006_v44  ;;  %v1272_v53 = vld [vmem:[#allocation2 + $0x80] sm:$0xff]  ;;  %v562_v57 = vadd.f32 1.0, %v2980_v39  ;;  %v421_v2 = vmul.f32 %v3157_v0, %v384_v49  ;;  %v385_v23 = vld [vmem:[%s3162_s17 + $0xd0] sm:$0x3] }
  0x4f   : > { %v3555_v51 = vpack.c.bf16 %v1263_v46, %v1263_v46  ;;  %2991 = vrcp.f32 %v573_v38  ;;  %989 = vst.msk [vmem:[#allocation3 + $0x4] sm:$0xf] %vm987_vm14, %v2664_v32  ;;  %991 = vst.msk [vmem:[#allocation3 + $0xc] sm:$0xf] %vm987_vm14, %v3543_v3  ;;  %v2984_v14 = vpop.eup %2983  ;;  %1070 = vrot.lane.b32.xlu0 %v2680_v29, %s3069_s20  ;;  %v1015_v55 = vld [vmem:[#allocation2 + $0x81] sm:$0xff]  ;;  %v3561_v15 = vpack.c.bf16 %v1272_v53, %v1272_v53  ;;  %v575_v58 = vadd.f32 1.0, %v2982_v42 }
  0x50   : > { %2993 = vrcp.f32 %v563_v47  ;;  %v2986_v61 = vpop.eup %2985  ;;  %v574_v63 = vadd.f32 1.0, %v2984_v14  ;;  %v3568_v4 = vpack.c.bf16 %v1015_v55, %v1015_v55  ;;  %v383_v52 = vld [vmem:[%s3162_s17 + $0xc0] sm:$0xff]  ;;  %v678_v12 = vadd.s32 3, %v3266_v6  ;;  %v1142_v13 = vld [vmem:[#allocation2 + $0x6a] sm:$0xff] }
  0x51   : > { %v1014_v50 = vld [vmem:[#allocation2 + $0x79] sm:$0xff]  ;;  %990 = vst.msk [vmem:[#allocation3 + $0x8] sm:$0xf] %vm987_vm14, %v3555_v51  ;;  %v2988_v16 = vpop.eup %2987  ;;  %1074 = vrot.lane.b32.xlu1 %v3549_v40, %s3069_s20  ;;  %2995 = vrcp.f32 %v562_v57  ;;  %999 = vst.msk [vmem:[#allocation3 + $0x2c] sm:$0xf] %vm987_vm14, %v3561_v15  ;;  %v564_v19 = vadd.f32 1.0, %v2986_v61  ;;  %v3583_v21 = vadd.f32 %v3164_v1, %v421_v2  ;;  %v420_v20 = vmul.f32 %v3157_v0, %v383_v52 }
  0x52   : > { %v1271_v35 = vld [vmem:[#allocation2 + $0x78] sm:$0xff]  ;;  %2997 = vrcp.f32 %v575_v58  ;;  %v576_v26 = vadd.f32 1.0, %v2988_v16  ;;  %v3577_v11 = vpack.c.bf16 %v1014_v50, %v1014_v50  ;;  %v1133_v59 = vld [vmem:[#allocation2 + $0x2] sm:$0xff]  ;;  %v2696_v22 = vpack.c.bf16 %v1134_v10, %v1134_v10 }
  0x53   : > { %v3570_v5 = vpack.c.bf16 %v1271_v35, %v1271_v35  ;;  %1072 = vrot.lane.b32.xlu0 %v3553_v34, %s3069_s20  ;;  %2999 = vrcp.f32 %v574_v63  ;;  %v682_v25 = vadd.s32 7, %v3266_v6  ;;  %v2490_v60 = vmul.f32 -1.442695, %v3583_v21  ;;  %v1141_v30 = vld [vmem:[#allocation2 + $0x62] sm:$0xff]  ;;  %v1135_v53 = vld [vmem:[#allocation2 + $0x1a] sm:$0xff] }
  0x54   : > { %3001 = vrcp.f32 %v564_v19  ;;  %v3592_v29 = vadd.f32 %v3164_v1, %v420_v20  ;;  %v422_v27 = vmul.f32 %v3157_v0, %v385_v23  ;;  %v2695_v28 = vpack.c.bf16 %v1133_v59, %v1133_v59  ;;  %v1136_v39 = vld [vmem:[#allocation2 + $0x22] sm:$0xff]  ;;  %v1143_v10 = vld [vmem:[#allocation2 + $0x7a] sm:$0xff] }
  0x55   : > { %998 = vst.msk [vmem:[#allocation3 + $0x28] sm:$0xf] %vm987_vm14, %v3570_v5  ;;  %1090 = vrot.lane.b32.xlu1 %v3568_v4, %s3069_s20  ;;  %3003 = vrcp.f32 %v576_v26  ;;  %vm692_vm8 = vcmp.ge.s32.totalorder %v678_v12, 0  ;;  %vm702_vm9 = vcmp.lt.s32.totalorder %v678_v12, 16  ;;  %v2704_v37 = vpack.c.bf16 %v1142_v13, %v1142_v13  ;;  %v1144_v50 = vld [vmem:[#allocation2 + $0x82] sm:$0xff]  ;;  %v1266_v38 = vld [vmem:[#allocation2 + $0x38] sm:$0xff] }
  0x56   : > { %3005 = vpow2.f32 %v2490_v60  ;;  %v2489_v31 = vmul.f32 -1.442695, %v3592_v29  ;;  %v3599_v33 = vadd.f32 %v3164_v1, %v422_v27  ;;  %vm696_vm13 = vcmp.ge.s32.totalorder %v682_v25, 0  ;;  %vm3623_vm0 = vmand %vm692_vm8, %vm702_vm9  ;;  %v387_v42 = vld [vmem:[%s3162_s17 + $0xe0] sm:$0xff] }
  0x57   : > { %1088 = vrot.lane.b32.xlu0 %v3577_v11, %s3069_s20  ;;  %vm706_vm15 = vcmp.lt.s32.totalorder %v682_v25, 16  ;;  %v2703_v47 = vpack.c.bf16 %v1141_v30, %v1141_v30  ;;  %v3629_v55 = vpack.c.bf16 %v1136_v39, %v1136_v39  ;;  %vm3647_vm3 = vmand %vm3623_vm0, %vm719_vm2  ;;  %v3652_v63 = vpack.c.bf16 %v1135_v53, %v1135_v53  ;;  %v1265_v39 = vld [vmem:[#allocation2 + $0x30] sm:$0xff] }
  0x58   : > { %3007 = vpow2.f32 %v2489_v31  ;;  %v2491_v46 = vmul.f32 -1.442695, %v3599_v33  ;;  %vm3636_vm1 = vmand %vm696_vm13, %vm706_vm15  ;;  %v3670_v59 = vpack.c.bf16 %v1144_v50, %v1144_v50  ;;  %v3714_v44 = vpack.c.bf16 %v1266_v38, %v1266_v38 }
  0x59   : > { %1199 = vrot.lane.b32.xlu1 %v2696_v22, %s3070_s21  ;;  %vm3664_vm4 = vmand %vm3636_vm1, %vm719_vm2 }
  0x5a   : > { %3009 = vpow2.f32 %v2491_v46  ;;  %vm3679_vm7 = vmand %vm3623_vm0, %vm754_vm5  ;;  %v683_v46 = vadd.s32 8, %v3266_v6 }
  0x5b   : > { %v2990_v32 = vpop.eup %2989  ;;  %1197 = vrot.lane.b32.xlu0 %v2695_v28, %s3070_s21  ;;  %vm778_vm8 = vmand %vm3636_vm1, %vm754_vm5 }
  0x5c   : > { %v2992_v41 = vpop.eup %2991  ;;  %v651_v49 = vmul.f32 %v2990_v32, %v3306_v62  ;;  %vm697_vm9 = vcmp.ge.s32.totalorder %v683_v46, 0 }
  0x5d   : > { %v2994_v45 = vpop.eup %2993  ;;  %v663_v14 = vmul.f32 %v2992_v41, %v3311_v7  ;;  %1215 = vrot.lane.b32.xlu1 %v2704_v37, %s3070_s21  ;;  %v1274_v41 = vld [vmem:[#allocation2 + $0x98] sm:$0xff] }
  0x5e   : > { %v853_v57 = vsel %vm3606_vm10, %v651_v49, 0.0  ;;  %v653_v62 = vmul.f32 %v2994_v45, %v3321_v17  ;;  %v2996_v61 = vpop.eup %2995  ;;  %vm707_vm10 = vcmp.lt.s32.totalorder %v683_v46, 16  ;;  %v386_v45 = vld [vmem:[%s3162_s17 + $0xd8] sm:$0xff] }
  0x5f   : > { %885 = vst.msk [vmem:[#allocation2 + $0x40] sm:$0x3] %vm878_vm12, %v853_v57  ;;  %v865_v7 = vsel %vm3614_vm11, %v663_v14, 0.0  ;;  %v2998_v17 = vpop.eup %2997  ;;  %1213 = vrot.lane.b32.xlu0 %v2703_v47, %s3070_s21  ;;  %v652_v16 = vmul.f32 %v2996_v61, %v3325_v24  ;;  %v1273_v47 = vld [vmem:[#allocation2 + $0x90] sm:$0xff]  ;;  %vm3729_vm11 = vmand %vm697_vm9, %vm707_vm10  ;;  %v424_v14 = vmul.f32 %v3157_v0, %v387_v42  ;;  %v423_v57 = vmul.f32 %v3157_v0, %v386_v45 }
  0x60   : > { %897 = vst.msk [vmem:[#allocation2 + $0xa0] sm:$0x3] %vm878_vm12, %v865_v7  ;;  %v855_v2 = vsel %vm3623_vm0, %v653_v62, 0.0  ;;  %v3000_v52 = vpop.eup %2999  ;;  %v665_v19 = vmul.f32 %v2998_v17, %v3339_v36  ;;  %vm746_vm13 = vmand %vm3729_vm11, %vm719_vm2  ;;  %vm1633_vm9 = vcmask 191648   ;;  %vm1763_vm10 = vcmask 224448  }
  0x61   : > { %887 = vst.msk [vmem:[#allocation2 + $0x50] sm:$0xff] %vm875_vm6, %v855_v2  ;;  %v3002_v12 = vpop.eup %3001  ;;  %1203 = vrot.lane.b32.xlu1 %v3629_v55, %s3070_s21  ;;  %v854_v24 = vsel %vm3647_vm3, %v652_v16, 0.0  ;;  %v664_v20 = vmul.f32 %v3000_v52, %v3351_v43  ;;  %v3693_v43 = vpack.c.bf16 %v1143_v10, %v1143_v10  ;;  %v3753_v50 = vadd.f32 %v3164_v1, %v423_v57  ;;  %vm781_vm15 = vmand %vm3729_vm11, %vm754_vm5 }
  0x62   : > { %v3004_v22 = vpop.eup %3003  ;;  %886 = vst.msk [vmem:[#allocation2 + $0x48] sm:$0xff] %vm875_vm6, %v854_v24  ;;  %v867_v23 = vsel %vm3636_vm1, %v665_v19, 0.0  ;;  %v654_v13 = vmul.f32 %v3002_v12, %v3356_v48  ;;  %v1402_v19 = vld [vmem:[#allocation2 + $0x91] sm:$0xff]  ;;  %v388_v12 = vld [vmem:[%s3162_s17 + $0xe8] sm:$0x3]  ;;  %s2457_s17 = sshll.u32 %s4366_s22, 5 }
  0x63   : > { %1201 = vrot.lane.b32.xlu0 %v3652_v63, %s3070_s21  ;;  %899 = vst.msk [vmem:[#allocation2 + $0xb0] sm:$0xff] %vm875_vm6, %v867_v23  ;;  %v866_v25 = vsel %vm3664_vm4, %v664_v20, 0.0  ;;  %v666_v60 = vmul.f32 %v3004_v22, %v3369_v54  ;;  %v3006_v27 = vpop.eup %3005  ;;  %v2492_v16 = vmul.f32 -1.442695, %v3753_v50  ;;  %v425_v24 = vmul.f32 %v3157_v0, %v388_v12  ;;  %s337_s19 = sadd.s32 %s2457_s17, %s2456_s16 }
  0x64   : > { %898 = vst.msk [vmem:[#allocation2 + $0xa8] sm:$0xff] %vm875_vm6, %v866_v25  ;;  %v856_v48 = vsel %vm3679_vm7, %v654_v13, 0.0  ;;  %v578_v30 = vadd.f32 1.0, %v3006_v27  ;;  %v1523_v25 = vld [vmem:[#allocation2 + $0x32] sm:$0xff]  ;;  %vm1245_vm7 = vcmask 93248  }
  0x65   : > { %1219 = vrot.lane.b32.xlu1 %v3670_v59, %s3070_s21  ;;  %888 = vst.msk [vmem:[#allocation2 + $0x58] sm:$0x3] %vm878_vm12, %v856_v48  ;;  %v868_v28 = vsel %vm778_vm8, %v666_v60, 0.0  ;;  %v3008_v31 = vpop.eup %3007  ;;  %v1531_v48 = vld [vmem:[#allocation2 + $0x92] sm:$0xff]  ;;  %vm1504_vm8 = vcmask 158848  }
  0x66   : > { %900 = vst.msk [vmem:[#allocation2 + $0xb8] sm:$0x3] %vm878_vm12, %v868_v28  ;;  %3011 = vrcp.f32 %v578_v30  ;;  %v577_v54 = vadd.f32 1.0, %v3008_v31  ;;  %v1395_v35 = vld [vmem:[#allocation2 + $0x39] sm:$0xff] }
  0x67   : > { %1217 = vrot.lane.b32.xlu0 %v3693_v43, %s3070_s21  ;;  %v3010_v37 = vpop.eup %3009  ;;  %v3770_v52 = vpack.c.bf16 %v1395_v35, %v1395_v35  ;;  %v1524_v22 = vld [vmem:[#allocation2 + $0x3a] sm:$0xff] }
  0x68   : > { %3013 = vrcp.f32 %v577_v54  ;;  %v579_v32 = vadd.f32 1.0, %v3010_v37  ;;  %v1532_v60 = vld [vmem:[#allocation2 + $0x9a] sm:$0xff]  ;;  %v1654_v30 = vld [vmem:[#allocation2 + $0x50] sm:$0xff] }
  0x69   : > { %1329 = vrot.lane.b32.xlu1 %v3543_v3, %s3071_s28  ;;  %v3719_v3 = vpack.c.bf16 %v1265_v39, %v1265_v39  ;;  %v1653_v38 = vld [vmem:[#allocation2 + $0x48] sm:$0xff]  ;;  %v920_v35 = vld [vmem:[#allocation2 + $0x98] sm:$0xff] }
  0x6a   : > { %3015 = vrcp.f32 %v579_v32  ;;  %v3844_v9 = vpack.c.bf16 %v1653_v38, %v1653_v38 }
  0x6b   : > { %1327 = vrot.lane.b32.xlu0 %v3555_v51, %s3071_s28  ;;  %v3723_v51 = vpack.c.bf16 %v1274_v41, %v1274_v41  ;;  %v1662_v41 = vld [vmem:[#allocation2 + $0xb0] sm:$0xff] }
  0x6c   : > { %v1790_v18 = vld [vmem:[#allocation2 + $0xa9] sm:$0xff] }
  0x6d   : > { %1345 = vrot.lane.b32.xlu1 %v3561_v15, %s3071_s28  ;;  %v3727_v15 = vpack.c.bf16 %v1273_v47, %v1273_v47  ;;  %v3848_v47 = vpack.c.bf16 %v1662_v41, %v1662_v41 }
  0x6f   : > { %1343 = vrot.lane.b32.xlu0 %v3570_v5, %s3071_s28 }
  0x71   : > { %1333 = vrot.lane.b32.xlu1 %v3714_v44, %s3071_s28 }
  0x73   : > { %1331 = vrot.lane.b32.xlu0 %v3719_v3, %s3071_s28  ;;  %v3012_v5 = vpop.eup %3011 }
  0x74   : > { %v668_v53 = vmul.f32 %v3012_v5, %v3583_v21  ;;  %v3750_v21 = vadd.f32 %v3164_v1, %v424_v14  ;;  %v1782_v5 = vld [vmem:[#allocation2 + $0x49] sm:$0xff] }
  0x75   : > { %1349 = vrot.lane.b32.xlu1 %v3723_v51, %s3071_s28  ;;  %v3014_v62 = vpop.eup %3013  ;;  %v3873_v57 = vpack.c.bf16 %v1782_v5, %v1782_v5 }
  0x76   : > { %v870_v58 = vsel %vm3729_vm11, %v668_v53, 0.0  ;;  %v667_v61 = vmul.f32 %v3014_v62, %v3592_v29  ;;  %v2493_v2 = vmul.f32 -1.442695, %v3750_v21  ;;  %v1791_v53 = vld [vmem:[#allocation2 + $0xb1] sm:$0xff]  ;;  %vm1892_vm11 = vcmask 257248  }
  0x77   : > { %1347 = vrot.lane.b32.xlu0 %v3727_v15, %s3071_s28  ;;  %902 = vst.msk [vmem:[#allocation2 + $0xc8] sm:$0xff] %vm875_vm6, %v870_v58  ;;  %v3016_v7 = vpop.eup %3015  ;;  %v3878_v62 = vpack.c.bf16 %v1791_v53, %v1791_v53  ;;  %v912_v58 = vld [vmem:[#allocation2 + $0x38] sm:$0xff] }
  0x78   : > { %v869_v17 = vsel %vm746_vm13, %v667_v61, 0.0  ;;  %v669_v29 = vmul.f32 %v3016_v7, %v3599_v33  ;;  %3017 = vpow2.f32 %v2493_v2  ;;  %v911_v61 = vld [vmem:[#allocation2 + $0x30] sm:$0xff]  ;;  %v2676_v2 = vpack.c.bf16 %v920_v35, %v920_v35 }
  0x79   : > { %1458 = vrot.lane.b32.xlu1 %v3549_v40, %s3072_s29  ;;  %901 = vst.msk [vmem:[#allocation2 + $0xc0] sm:$0xff] %vm875_vm6, %v869_v17  ;;  %v1394_v40 = vld [vmem:[#allocation2 + $0x31] sm:$0xff]  ;;  %3019 = vpow2.f32 %v2492_v16  ;;  %v2667_v7 = vpack.c.bf16 %v911_v61, %v911_v61  ;;  %vm2021_vm13 = vcmask 290048  }
  0x7a   : > { %v871_v10 = vsel %vm781_vm15, %v669_v29, 0.0  ;;  %v3775_v33 = vpack.c.bf16 %v1394_v40, %v1394_v40  ;;  %v919_v17 = vld [vmem:[#allocation2 + $0x90] sm:$0xff]  ;;  %1001 = vst.msk [vmem:[#allocation3 + $0x34] sm:$0xf] %vm987_vm14, %v2676_v2  ;;  %vm2114_vm15 = vcmask 293888  }
  0x7b   : > { %1456 = vrot.lane.b32.xlu0 %v3553_v34, %s3072_s29  ;;  %v1403_v34 = vld [vmem:[#allocation2 + $0x99] sm:$0xff]  ;;  %903 = vst.msk [vmem:[#allocation2 + $0xd0] sm:$0x3] %vm878_vm12, %v871_v10  ;;  %v2675_v16 = vpack.c.bf16 %v919_v17, %v919_v17  ;;  %v2899_v29 = vld [vmem:[%s4302_s4 + $0x10] ss:$0 sps:$4 sm:$0x33]  }
  0x7c   : > { %v3779_v26 = vpack.c.bf16 %v1403_v34, %v1403_v34  ;;  %992 = vst.msk [vmem:[#allocation3 + $0x10] sm:$0xf] %vm987_vm14, %v2667_v7  ;;  %v1399_v2 = vld [vmem:[#allocation2 + $0x69] sm:$0xff] }
  0x7d   : > { %1474 = vrot.lane.b32.xlu1 %v3568_v4, %s3072_s29  ;;  %v3783_v4 = vpack.c.bf16 %v1402_v19, %v1402_v19  ;;  %1000 = vst.msk [vmem:[#allocation3 + $0x30] sm:$0xf] %vm987_vm14, %v2675_v16  ;;  %v2901_v19 = vld [vmem:[%s4302_s4 + $0x8] sm:$0xff]  }
  0x7f   : > { %1472 = vrot.lane.b32.xlu0 %v3577_v11, %s3072_s29  ;;  %v3792_v11 = vadd.f32 %v3164_v1, %v425_v24  ;;  %v3801_v1 = vpack.c.bf16 %v1524_v22, %v1524_v22  ;;  %v913_v22 = vld [vmem:[#allocation2 + $0x48] sm:$0xff] }
  0x80   : > { %v1277_v61 = vld [vmem:[#allocation2 + $0xc0] sm:$0xff] }
  0x81   : > { %1462 = vrot.lane.b32.xlu1 %v3770_v52, %s3072_s29  ;;  %v2494_v13 = vmul.f32 -1.442695, %v3792_v11  ;;  %v4003_v7 = vpack.c.bf16 %v1277_v61, %v1277_v61 }
  0x83   : > { %1460 = vrot.lane.b32.xlu0 %v3775_v33, %s3072_s29 }
  0x85   : > { %1478 = vrot.lane.b32.xlu1 %v3779_v26, %s3072_s29  ;;  %v3018_v20 = vpop.eup %3017 }
  0x86   : > { %v3020_v36 = vpop.eup %3019  ;;  %v581_v23 = vadd.f32 1.0, %v3018_v20  ;;  %v1912_v20 = vld [vmem:[#allocation2 + $0x52] sm:$0xff] }
  0x87   : > { %1476 = vrot.lane.b32.xlu0 %v3783_v4, %s3072_s29  ;;  %v580_v0 = vadd.f32 1.0, %v3020_v36  ;;  %v914_v36 = vld [vmem:[#allocation2 + $0x50] sm:$0xff] }
  0x88   : > { %3021 = vrcp.f32 %v581_v23 }
  0x89   : > { %1587 = vrot.lane.b32.xlu1 %v3629_v55, %s3073_s30  ;;  %3023 = vrcp.f32 %v580_v0  ;;  %v3805_v55 = vpack.c.bf16 %v1523_v25, %v1523_v25  ;;  %v2669_v0 = vpack.c.bf16 %v913_v22, %v913_v22  ;;  %v1528_v22 = vld [vmem:[#allocation2 + $0x6a] sm:$0xff] }
  0x8a   : > { %3025 = vpow2.f32 %v2494_v13  ;;  %v2670_v13 = vpack.c.bf16 %v914_v36, %v914_v36 }
  0x8b   : > { %1585 = vrot.lane.b32.xlu0 %v3652_v63, %s3073_s30  ;;  %v3809_v63 = vpack.c.bf16 %v1532_v60, %v1532_v60  ;;  %v3920_v60 = vpack.c.bf16 %v1912_v20, %v1912_v20  ;;  %994 = vst.msk [vmem:[#allocation3 + $0x18] sm:$0xf] %vm987_vm14, %v2669_v0 }
  0x8c   : > { %995 = vst.msk [vmem:[#allocation3 + $0x1c] sm:$0xf] %vm987_vm14, %v2670_v13  ;;  %v1527_v13 = vld [vmem:[#allocation2 + $0x62] sm:$0xff] }
  0x8d   : > { %1603 = vrot.lane.b32.xlu1 %v3670_v59, %s3073_s30  ;;  %v3813_v59 = vpack.c.bf16 %v1531_v48, %v1531_v48  ;;  %v922_v48 = vld [vmem:[#allocation2 + $0xb0] sm:$0xff] }
  0x8f   : > { %1601 = vrot.lane.b32.xlu0 %v3693_v43, %s3073_s30  ;;  %v684_v43 = vadd.s32 9, %v3266_v6 }
  0x91   : > { %1591 = vrot.lane.b32.xlu1 %v3801_v1, %s3073_s30  ;;  %vm698_vm0 = vcmp.ge.s32.totalorder %v684_v43, 0  ;;  %vm708_vm1 = vcmp.lt.s32.totalorder %v684_v43, 16  ;;  %v921_v43 = vld [vmem:[#allocation2 + $0xa8] sm:$0xff] }
  0x92   : > { %vm3823_vm3 = vmand %vm698_vm0, %vm708_vm1 }
  0x93   : > { %1589 = vrot.lane.b32.xlu0 %v3805_v55, %s3073_s30  ;;  %vm749_vm4 = vmand %vm3823_vm3, %vm719_vm2 }
  0x94   : > { %vm784_vm2 = vmand %vm3823_vm3, %vm754_vm5  ;;  %vm1116_vm5 = vcmask 60448  }
  0x95   : > { %1607 = vrot.lane.b32.xlu1 %v3809_v63, %s3073_s30  ;;  %v3022_v27 = vpop.eup %3021 }
  0x96   : > { %v3024_v28 = vpop.eup %3023  ;;  %v671_v31 = vmul.f32 %v3022_v27, %v3750_v21  ;;  %v3882_v21 = vpack.c.bf16 %v1790_v18, %v1790_v18 }
  0x97   : > { %1605 = vrot.lane.b32.xlu0 %v3813_v59, %s3073_s30  ;;  %v3026_v37 = vpop.eup %3025  ;;  %v670_v6 = vmul.f32 %v3024_v28, %v3753_v50  ;;  %v2668_v50 = vpack.c.bf16 %v912_v58, %v912_v58  ;;  %v1278_v58 = vld [vmem:[#allocation2 + $0xc8] sm:$0xff] }
  0x98   : > { %v873_v32 = vsel %vm3823_vm3, %v671_v31, 0.0  ;;  %v582_v39 = vadd.f32 1.0, %v3026_v37  ;;  %v1919_v31 = vld [vmem:[#allocation2 + $0xaa] sm:$0xff] }
  0x99   : > { %1717 = vrot.lane.b32.xlu1 %v3714_v44, %s3074_s7  ;;  %v3838_v44 = vpack.c.bf16 %v1654_v30, %v1654_v30  ;;  %905 = vst.msk [vmem:[#allocation2 + $0xe0] sm:$0xff] %vm875_vm6, %v873_v32  ;;  %v872_v46 = vsel %vm749_vm4, %v670_v6, 0.0  ;;  %v2678_v30 = vpack.c.bf16 %v922_v48, %v922_v48  ;;  %v3939_v6 = vpack.c.bf16 %v1919_v31, %v1919_v31  ;;  %v1535_v48 = vld [vmem:[#allocation2 + $0xc2] sm:$0xff] }
  0x9a   : > { %904 = vst.msk [vmem:[#allocation2 + $0xd8] sm:$0xff] %vm875_vm6, %v872_v46  ;;  %3027 = vrcp.f32 %v582_v39 }
  0x9b   : > { %1715 = vrot.lane.b32.xlu0 %v3719_v3, %s3074_s7  ;;  %v1661_v3 = vld [vmem:[#allocation2 + $0xa8] sm:$0xff]  ;;  %993 = vst.msk [vmem:[#allocation3 + $0x14] sm:$0xf] %vm987_vm14, %v2668_v50  ;;  %1003 = vst.msk [vmem:[#allocation3 + $0x3c] sm:$0xf] %vm987_vm14, %v2678_v30  ;;  %v4067_v30 = vpack.c.bf16 %v1535_v48, %v1535_v48 }
  0x9d   : > { %1733 = vrot.lane.b32.xlu1 %v3723_v51, %s3074_s7  ;;  %v3852_v51 = vpack.c.bf16 %v1661_v3, %v1661_v3 }
  0x9f   : > { %1731 = vrot.lane.b32.xlu0 %v3727_v15, %s3074_s7  ;;  %v1783_v15 = vld [vmem:[#allocation2 + $0x51] sm:$0xff] }
  0xa0   : > { %v3869_v45 = vpack.c.bf16 %v1783_v15, %v1783_v15 }
  0xa1   : > { %1721 = vrot.lane.b32.xlu1 %v3838_v44, %s3074_s7  ;;  %v1794_v61 = vld [vmem:[#allocation2 + $0xd9] sm:$0xff] }
  0xa3   : > { %1719 = vrot.lane.b32.xlu0 %v3844_v9, %s3074_s7 }
  0xa5   : > { %1737 = vrot.lane.b32.xlu1 %v3848_v47, %s3074_s7 }
  0xa7   : > { %1735 = vrot.lane.b32.xlu0 %v3852_v51, %s3074_s7  ;;  %v3028_v49 = vpop.eup %3027 }
  0xa8   : > { %v672_v42 = vmul.f32 %v3028_v49, %v3792_v11  ;;  %v2902_v11 = vld [vmem:[%s4302_s4] sm:$0xff]  }
  0xa9   : > { %1846 = vrot.lane.b32.xlu1 %v3770_v52, %s3075_s8 }
  0xaa   : > { %v874_v14 = vsel %vm784_vm2, %v672_v42, 0.0 }
  0xab   : > { %1844 = vrot.lane.b32.xlu0 %v3775_v33, %s3075_s8  ;;  %906 = vst.msk [vmem:[#allocation2 + $0xe8] sm:$0x3] %vm878_vm12, %v874_v14  ;;  %vm2139_vm12 = vcmask 1041408  }
  0xac   : > { %2846 = vmatprep.subr.msk.bf16.mxu0 %vm2139_vm12, %v2899_v29  ;;  %v2141_v10 = vsel %vm2139_vm12, %v2899_v29, 0  ;;  %2847 = vmatprep.subr.msk.bf16.mxu1 %vm2139_vm12, %v2899_v29  ;;  %v1398_v29 = vld [vmem:[#allocation2 + $0x61] sm:$0xff] }
  0xad   : > { %1862 = vrot.lane.b32.xlu1 %v3779_v26, %s3075_s8  ;;  %2819 = vmatpush3.bf16.msra.mxu0 %v2141_v10 }
  0xae   : > { %2843 = vmatpush3.bf16.msra.mxu1 %v2141_v10  ;;  %2820 = vmatprep.subr.bf16.mxu0 %v2901_v19  ;;  %v4020_v10 = vpack.c.bf16 %v1399_v2, %v1399_v2 }
  0xaf   : > { %1860 = vrot.lane.b32.xlu0 %v3783_v4, %s3075_s8  ;;  %2841 = vmatprep.subr.bf16.mxu1 %v2901_v19 }
  0xb1   : > { %1850 = vrot.lane.b32.xlu1 %v3869_v45, %s3075_s8  ;;  %2821 = vmatpush3.bf16.msra.mxu0 %v2901_v19 }
  0xb2   : > { %2844 = vmatpush3.bf16.msra.mxu1 %v2901_v19  ;;  %2822 = vmatprep.subr.bf16.mxu0 %v2902_v11  ;;  %v4025_v19 = vpack.c.bf16 %v1398_v29, %v1398_v29  ;;  %v1916_v29 = vld [vmem:[#allocation2 + $0x82] sm:$0xff] }
  0xb3   : > { %1848 = vrot.lane.b32.xlu0 %v3873_v57, %s3075_s8  ;;  %2842 = vmatprep.subr.bf16.mxu1 %v2902_v11 }
  0xb5   : > { %1866 = vrot.lane.b32.xlu1 %v3878_v62, %s3075_s8  ;;  %2823 = vmatpush3.bf16.msra.mxu0 %v2902_v11 }
  0xb6   : > { %2845 = vmatpush3.bf16.msra.mxu1 %v2902_v11 }
  0xb7   : > { %1864 = vrot.lane.b32.xlu0 %v3882_v21, %s3075_s8 }
  0xb9   : > { %1975 = vrot.lane.b32.xlu1 %v3801_v1, %s3076_s9 }
  0xbb   : > { %1973 = vrot.lane.b32.xlu0 %v3805_v55, %s3076_s9  ;;  %v1085_v40 = vpop.permute.xlu1 %1084 }
  0xbc   : > { %1125 = vst.msk [vmem:[#allocation3 + $0x20] sm:$0xf] %vm1116_vm5, %v1085_v40 }
  0xbd   : > { %v1069_v34 = vpop.permute.xlu0 %1068  ;;  %1991 = vrot.lane.b32.xlu1 %v3809_v63, %s3076_s9 }
  0xbe   : > { %1117 = vst.msk [vmem:[#allocation3] sm:$0xf] %vm1116_vm5, %v1069_v34 }
  0xbf   : > { %1989 = vrot.lane.b32.xlu0 %v3813_v59, %s3076_s9  ;;  %v1087_v12 = vpop.permute.xlu1 %1086 }
  0xc0   : > { %1126 = vst.msk [vmem:[#allocation3 + $0x24] sm:$0xf] %vm1116_vm5, %v1087_v12 }
  0xc1   : > { %v1071_v24 = vpop.permute.xlu0 %1070  ;;  %1078 = vrot.lane.b32.xlu1 %v3770_v52, %s3069_s20  ;;  %v1911_v52 = vld [vmem:[#allocation2 + $0x4a] sm:$0xff] }
  0xc2   : > { %1118 = vst.msk [vmem:[#allocation3 + $0x4] sm:$0xf] %vm1116_vm5, %v1071_v24  ;;  %v3927_v28 = vpack.c.bf16 %v1911_v52, %v1911_v52  ;;  %v4052_v52 = vpack.c.bf16 %v1528_v22, %v1528_v22 }
  0xc3   : > { %1076 = vrot.lane.b32.xlu0 %v3775_v33, %s3069_s20  ;;  %v1075_v23 = vpop.permute.xlu1 %1074  ;;  %v1920_v33 = vld [vmem:[#allocation2 + $0xb2] sm:$0xff] }
  0xc4   : > { %1120 = vst.msk [vmem:[#allocation3 + $0xc] sm:$0xf] %vm1116_vm5, %v1075_v23  ;;  %v3932_v37 = vpack.c.bf16 %v1920_v33, %v1920_v33  ;;  %v4057_v33 = vpack.c.bf16 %v1527_v13, %v1527_v13 }
  0xc5   : > { %v1073_v25 = vpop.permute.xlu0 %1072  ;;  %1094 = vrot.lane.b32.xlu1 %v3779_v26, %s3069_s20  ;;  %v2677_v26 = vpack.c.bf16 %v921_v43, %v921_v43 }
  0xc6   : > { %1119 = vst.msk [vmem:[#allocation3 + $0x8] sm:$0xf] %vm1116_vm5, %v1073_v25  ;;  %v1536_v25 = vld [vmem:[#allocation2 + $0xca] sm:$0xff] }
  0xc7   : > { %1092 = vrot.lane.b32.xlu0 %v3783_v4, %s3069_s20  ;;  %v1091_v27 = vpop.permute.xlu1 %1090  ;;  %1002 = vst.msk [vmem:[#allocation3 + $0x38] sm:$0xf] %vm987_vm14, %v2677_v26  ;;  %vm1375_vm14 = vcmask 126048  }
  0xc8   : > { %1128 = vst.msk [vmem:[#allocation3 + $0x2c] sm:$0xf] %vm1116_vm5, %v1091_v27  ;;  %v4062_v27 = vpack.c.bf16 %v1536_v25, %v1536_v25 }
  0xc9   : > { %v1089_v54 = vpop.permute.xlu0 %1088  ;;  %1979 = vrot.lane.b32.xlu1 %v3920_v60, %s3076_s9 }
  0xca   : > { %1127 = vst.msk [vmem:[#allocation3 + $0x28] sm:$0xf] %vm1116_vm5, %v1089_v54 }
  0xcb   : > { %1977 = vrot.lane.b32.xlu0 %v3927_v28, %s3076_s9  ;;  %v1200_v4 = vpop.permute.xlu1 %1199 }
  0xcc   : > { %1247 = vst.msk [vmem:[#allocation3 + $0x4] sm:$0xf] %vm1245_vm7, %v1200_v4 }
  0xcd   : > { %v1198_v38 = vpop.permute.xlu0 %1197  ;;  %1995 = vrot.lane.b32.xlu1 %v3932_v37, %s3076_s9 }
  0xce   : > { %1246 = vst.msk [vmem:[#allocation3] sm:$0xf] %vm1245_vm7, %v1198_v38 }
  0xcf   : > { %1993 = vrot.lane.b32.xlu0 %v3939_v6, %s3076_s9  ;;  %v1216_v32 = vpop.permute.xlu1 %1215 }
  0xd0   : > { %1255 = vst.msk [vmem:[#allocation3 + $0x24] sm:$0xf] %vm1245_vm7, %v1216_v32 }
  0xd1   : > { %v1214_v39 = vpop.permute.xlu0 %1213  ;;  %1082 = vrot.lane.b32.xlu1 %v3869_v45, %s3069_s20 }
  0xd2   : > { %1254 = vst.msk [vmem:[#allocation3 + $0x20] sm:$0xf] %vm1245_vm7, %v1214_v39  ;;  %v1666_v39 = vld [vmem:[#allocation2 + $0xe0] sm:$0xff] }
  0xd3   : > { %1080 = vrot.lane.b32.xlu0 %v3873_v57, %s3069_s20  ;;  %v1204_v46 = vpop.permute.xlu1 %1203 }
  0xd4   : > { %1249 = vst.msk [vmem:[#allocation3 + $0xc] sm:$0xf] %vm1245_vm7, %v1204_v46 }
  0xd5   : > { %v1202_v41 = vpop.permute.xlu0 %1201  ;;  %1098 = vrot.lane.b32.xlu1 %v3878_v62, %s3069_s20 }
  0xd6   : > { %1248 = vst.msk [vmem:[#allocation3 + $0x8] sm:$0xf] %vm1245_vm7, %v1202_v41 }
  0xd7   : > { %1096 = vrot.lane.b32.xlu0 %v3882_v21, %s3069_s20  ;;  %v1220_v3 = vpop.permute.xlu1 %1219  ;;  %s2458_s20 = sshll.u32 %s337_s19, 3 }
  0xd8   : > { %1257 = vst.msk [vmem:[#allocation3 + $0x2c] sm:$0xf] %vm1245_vm7, %v1220_v3  ;;  %v2774_v3 = vpack.c.bf16 %v1666_v39, %v1666_v39 }
  0xd9   : > { %v1218_v15 = vpop.permute.xlu0 %1217  ;;  %1207 = vrot.lane.b32.xlu1 %v3801_v1, %s3070_s21 }
  0xda   : > { %1256 = vst.msk [vmem:[#allocation3 + $0x28] sm:$0xf] %vm1245_vm7, %v1218_v15 }
  0xdb   : > { %1205 = vrot.lane.b32.xlu0 %v3805_v55, %s3070_s21  ;;  %v1330_v49 = vpop.permute.xlu1 %1329 }
  0xdc   : > { %1377 = vst.msk [vmem:[#allocation3 + $0x4] sm:$0xf] %vm1375_vm14, %v1330_v49 }
  0xdd   : > { %v1328_v5 = vpop.permute.xlu0 %1327  ;;  %1223 = vrot.lane.b32.xlu1 %v3809_v63, %s3070_s21 }
  0xde   : > { %1376 = vst.msk [vmem:[#allocation3] sm:$0xf] %vm1375_vm14, %v1328_v5 }
  0xdf   : > { %1221 = vrot.lane.b32.xlu0 %v3813_v59, %s3070_s21  ;;  %v1346_v42 = vpop.permute.xlu1 %1345 }
  0xe0   : > { %1385 = vst.msk [vmem:[#allocation3 + $0x24] sm:$0xf] %vm1375_vm14, %v1346_v42 }
  0xe1   : > { %v1344_v1 = vpop.permute.xlu0 %1343  ;;  %1211 = vrot.lane.b32.xlu1 %v3920_v60, %s3070_s21 }
  0xe2   : > { %1384 = vst.msk [vmem:[#allocation3 + $0x20] sm:$0xf] %vm1375_vm14, %v1344_v1 }
  0xe3   : > { %1209 = vrot.lane.b32.xlu0 %v3927_v28, %s3070_s21  ;;  %v1334_v55 = vpop.permute.xlu1 %1333 }
  0xe4   : > { %1379 = vst.msk [vmem:[#allocation3 + $0xc] sm:$0xf] %vm1375_vm14, %v1334_v55  ;;  %v1787_v55 = vld [vmem:[#allocation2 + $0x81] sm:$0xff] }
  0xe5   : > { %v1332_v63 = vpop.permute.xlu0 %1331  ;;  %1227 = vrot.lane.b32.xlu1 %v3932_v37, %s3070_s21 }
  0xe6   : > { %1378 = vst.msk [vmem:[#allocation3 + $0x8] sm:$0xf] %vm1375_vm14, %v1332_v63 }
  0xe7   : > { %1225 = vrot.lane.b32.xlu0 %v3939_v6, %s3070_s21  ;;  %v1350_v59 = vpop.permute.xlu1 %1349 }
  0xe8   : > { %1387 = vst.msk [vmem:[#allocation3 + $0x2c] sm:$0xf] %vm1375_vm14, %v1350_v59  ;;  %v1786_v59 = vld [vmem:[#allocation2 + $0x79] sm:$0xff] }
  0xe9   : > { %v1348_v53 = vpop.permute.xlu0 %1347  ;;  %1337 = vrot.lane.b32.xlu1 %v3838_v44, %s3071_s28 }
  0xea   : > { %1386 = vst.msk [vmem:[#allocation3 + $0x28] sm:$0xf] %vm1375_vm14, %v1348_v53 }
  0xeb   : > { %1335 = vrot.lane.b32.xlu0 %v3844_v9, %s3071_s28  ;;  %v1459_v14 = vpop.permute.xlu1 %1458  ;;  %v3998_v9 = vpack.c.bf16 %v1278_v58, %v1278_v58 }
  0xec   : > { %1506 = vst.msk [vmem:[#allocation3 + $0x4] sm:$0xf] %vm1504_vm8, %v1459_v14  ;;  %v2782_v14 = vpack.c.bf16 %v1787_v55, %v1787_v55 }
  0xed   : > { %v1457_v18 = vpop.permute.xlu0 %1456  ;;  %1353 = vrot.lane.b32.xlu1 %v3848_v47, %s3071_s28 }
  0xee   : > { %1505 = vst.msk [vmem:[#allocation3] sm:$0xf] %vm1504_vm8, %v1457_v18  ;;  %v1795_v18 = vld [vmem:[#allocation2 + $0xe1] sm:$0xff] }
  0xef   : > { %1351 = vrot.lane.b32.xlu0 %v3852_v51, %s3071_s28  ;;  %v1475_v44 = vpop.permute.xlu1 %1474 }
  0xf0   : > { %1514 = vst.msk [vmem:[#allocation3 + $0x24] sm:$0xf] %vm1504_vm8, %v1475_v44  ;;  %v2781_v44 = vpack.c.bf16 %v1786_v59, %v1786_v59 }
  0xf1   : > { %v1473_v50 = vpop.permute.xlu0 %1472  ;;  %1341 = vrot.lane.b32.xlu1 %v3517_v8, %s3071_s28 }
  0xf2   : > { %1513 = vst.msk [vmem:[#allocation3 + $0x20] sm:$0xf] %vm1504_vm8, %v1473_v50 }
  0xf3   : > { %1339 = vrot.lane.b32.xlu0 %v3497_v56, %s3071_s28  ;;  %v1463_v47 = vpop.permute.xlu1 %1462 }
  0xf4   : > { %1508 = vst.msk [vmem:[#allocation3 + $0xc] sm:$0xf] %vm1504_vm8, %v1463_v47 }
  0xf5   : > { %v1461_v51 = vpop.permute.xlu0 %1460  ;;  %1357 = vrot.lane.b32.xlu1 %v3998_v9, %s3071_s28 }
  0xf6   : > { %1507 = vst.msk [vmem:[#allocation3 + $0x8] sm:$0xf] %vm1504_vm8, %v1461_v51 }
  0xf7   : > { %1355 = vrot.lane.b32.xlu0 %v4003_v7, %s3071_s28  ;;  %v1479_v35 = vpop.permute.xlu1 %1478 }
  0xf8   : > { %1516 = vst.msk [vmem:[#allocation3 + $0x2c] sm:$0xf] %vm1504_vm8, %v1479_v35 }
  0xf9   : > { %v1477_v17 = vpop.permute.xlu0 %1476  ;;  %1466 = vrot.lane.b32.xlu1 %v3869_v45, %s3072_s29  ;;  %v1407_v45 = vld [vmem:[#allocation2 + $0xc9] sm:$0xff] }
  0xfa   : > { %1515 = vst.msk [vmem:[#allocation3 + $0x28] sm:$0xf] %vm1504_vm8, %v1477_v17  ;;  %v4030_v24 = vpack.c.bf16 %v1407_v45, %v1407_v45 }
  0xfb   : > { %1464 = vrot.lane.b32.xlu0 %v3873_v57, %s3072_s29  ;;  %v1588_v16 = vpop.permute.xlu1 %1587  ;;  %v1406_v57 = vld [vmem:[#allocation2 + $0xc1] sm:$0xff] }
  0xfc   : > { %1635 = vst.msk [vmem:[#allocation3 + $0x4] sm:$0xf] %vm1633_vm9, %v1588_v16  ;;  %v4035_v11 = vpack.c.bf16 %v1406_v57, %v1406_v57 }
  0xfd   : > { %v1586_v40 = vpop.permute.xlu0 %1585  ;;  %1482 = vrot.lane.b32.xlu1 %v3878_v62, %s3072_s29 }
  0xfe   : > { %1634 = vst.msk [vmem:[#allocation3] sm:$0xf] %vm1633_vm9, %v1586_v40 }
  0xff   : > { %1480 = vrot.lane.b32.xlu0 %v3882_v21, %s3072_s29  ;;  %v1604_v34 = vpop.permute.xlu1 %1603 }
 0x100   : > { %1643 = vst.msk [vmem:[#allocation3 + $0x24] sm:$0xf] %vm1633_vm9, %v1604_v34  ;;  %v2798_v34 = vpack.c.bf16 %v1916_v29, %v1916_v29 }
 0x101   : > { %v1602_v12 = vpop.permute.xlu0 %1601  ;;  %1470 = vrot.lane.b32.xlu1 %v4020_v10, %s3072_s29 }
 0x102   : > { %1642 = vst.msk [vmem:[#allocation3 + $0x20] sm:$0xf] %vm1633_vm9, %v1602_v12 }
 0x103   : > { %1468 = vrot.lane.b32.xlu0 %v4025_v19, %s3072_s29  ;;  %v1592_v62 = vpop.permute.xlu1 %1591 }
 0x104   : > { %1637 = vst.msk [vmem:[#allocation3 + $0xc] sm:$0xf] %vm1633_vm9, %v1592_v62 }
 0x105   : > { %v1590_v21 = vpop.permute.xlu0 %1589  ;;  %1486 = vrot.lane.b32.xlu1 %v4030_v24, %s3072_s29 }
 0x106   : > { %1636 = vst.msk [vmem:[#allocation3 + $0x8] sm:$0xf] %vm1633_vm9, %v1590_v21 }
 0x107   : > { %1484 = vrot.lane.b32.xlu0 %v4035_v11, %s3072_s29  ;;  %v1608_v20 = vpop.permute.xlu1 %1607  ;;  %s4207_s29 = scalar_lea.vmem %s4299_s1, %s2458_s20 }
 0x108   : > { %1645 = vst.msk [vmem:[#allocation3 + $0x2c] sm:$0xf] %vm1633_vm9, %v1608_v20 }
 0x109   : > { %v1606_v36 = vpop.permute.xlu0 %1605  ;;  %1595 = vrot.lane.b32.xlu1 %v3920_v60, %s3073_s30 }
 0x10a   : > { %1644 = vst.msk [vmem:[#allocation3 + $0x28] sm:$0xf] %vm1633_vm9, %v1606_v36 }
 0x10b   : > { %1593 = vrot.lane.b32.xlu0 %v3927_v28, %s3073_s30  ;;  %v1718_v23 = vpop.permute.xlu1 %1717 }
 0x10c   : > { %1765 = vst.msk [vmem:[#allocation3 + $0x4] sm:$0xf] %vm1763_vm10, %v1718_v23 }
 0x10d   : > { %v1716_v0 = vpop.permute.xlu0 %1715  ;;  %1611 = vrot.lane.b32.xlu1 %v3932_v37, %s3073_s30  ;;  %v1658_v37 = vld [vmem:[#allocation2 + $0x80] sm:$0xff] }
 0x10e   : > { %1764 = vst.msk [vmem:[#allocation3] sm:$0xf] %vm1763_vm10, %v1716_v0  ;;  %v2766_v32 = vpack.c.bf16 %v1658_v37, %v1658_v37 }
 0x10f   : > { %1609 = vrot.lane.b32.xlu0 %v3939_v6, %s3073_s30  ;;  %v1734_v60 = vpop.permute.xlu1 %1733  ;;  %v1657_v6 = vld [vmem:[#allocation2 + $0x78] sm:$0xff] }
 0x110   : > { %1773 = vst.msk [vmem:[#allocation3 + $0x24] sm:$0xf] %vm1763_vm10, %v1734_v60  ;;  %v2765_v46 = vpack.c.bf16 %v1657_v6, %v1657_v6 }
 0x111   : > { %v1732_v43 = vpop.permute.xlu0 %1731  ;;  %1599 = vrot.lane.b32.xlu1 %v4052_v52, %s3073_s30 }
 0x112   : > { %1772 = vst.msk [vmem:[#allocation3 + $0x20] sm:$0xf] %vm1763_vm10, %v1732_v43 }
 0x113   : > { %1597 = vrot.lane.b32.xlu0 %v4057_v33, %s3073_s30  ;;  %v1722_v28 = vpop.permute.xlu1 %1721 }
 0x114   : > { %1767 = vst.msk [vmem:[#allocation3 + $0xc] sm:$0xf] %vm1763_vm10, %v1722_v28 }
 0x115   : > { %v1720_v26 = vpop.permute.xlu0 %1719  ;;  %1615 = vrot.lane.b32.xlu1 %v4062_v27, %s3073_s30 }
 0x116   : > { %1766 = vst.msk [vmem:[#allocation3 + $0x8] sm:$0xf] %vm1763_vm10, %v1720_v26 }
 0x117   : > { %1613 = vrot.lane.b32.xlu0 %v4067_v30, %s3073_s30  ;;  %v1738_v31 = vpop.permute.xlu1 %1737 }
 0x118   : > { %1775 = vst.msk [vmem:[#allocation3 + $0x2c] sm:$0xf] %vm1763_vm10, %v1738_v31 }
 0x119   : > { %v1736_v54 = vpop.permute.xlu0 %1735  ;;  %1725 = vrot.lane.b32.xlu1 %v3517_v8, %s3074_s7 }
 0x11a   : > { %1774 = vst.msk [vmem:[#allocation3 + $0x28] sm:$0xf] %vm1763_vm10, %v1736_v54 }
 0x11b   : > { %1723 = vrot.lane.b32.xlu0 %v3497_v56, %s3074_s7  ;;  %v1847_v4 = vpop.permute.xlu1 %1846  ;;  %v1665_v56 = vld [vmem:[#allocation2 + $0xd8] sm:$0xff] }
 0x11c   : > { %1894 = vst.msk [vmem:[#allocation3 + $0x4] sm:$0xf] %vm1892_vm11, %v1847_v4  ;;  %v2773_v49 = vpack.c.bf16 %v1665_v56, %v1665_v56 }
 0x11d   : > { %v1845_v38 = vpop.permute.xlu0 %1844  ;;  %1741 = vrot.lane.b32.xlu1 %v3998_v9, %s3074_s7  ;;  %v2790_v9 = vpack.c.bf16 %v1795_v18, %v1795_v18 }
 0x11e   : > { %1893 = vst.msk [vmem:[#allocation3] sm:$0xf] %vm1892_vm11, %v1845_v38 }
 0x11f   : > { %1739 = vrot.lane.b32.xlu0 %v4003_v7, %s3074_s7  ;;  %v1863_v8 = vpop.permute.xlu1 %1862  ;;  %v2789_v7 = vpack.c.bf16 %v1794_v61, %v1794_v61 }
 0x120   : > { %1902 = vst.msk [vmem:[#allocation3 + $0x24] sm:$0xf] %vm1892_vm11, %v1863_v8 }
 0x121   : > { %v1861_v41 = vpop.permute.xlu0 %1860  ;;  %1729 = vrot.lane.b32.xlu1 %v2766_v32, %s3074_s7 }
 0x122   : > { %1901 = vst.msk [vmem:[#allocation3 + $0x20] sm:$0xf] %vm1892_vm11, %v1861_v41 }
 0x123   : > { %1727 = vrot.lane.b32.xlu0 %v2765_v46, %s3074_s7  ;;  %v1851_v15 = vpop.permute.xlu1 %1850 }
 0x124   : > { %1896 = vst.msk [vmem:[#allocation3 + $0xc] sm:$0xf] %vm1892_vm11, %v1851_v15 }
 0x125   : > { %v1849_v5 = vpop.permute.xlu0 %1848  ;;  %1745 = vrot.lane.b32.xlu1 %v2774_v3, %s3074_s7 }
 0x126   : > { %1895 = vst.msk [vmem:[#allocation3 + $0x8] sm:$0xf] %vm1892_vm11, %v1849_v5 }
 0x127   : > { %1743 = vrot.lane.b32.xlu0 %v2773_v49, %s3074_s7  ;;  %v1867_v42 = vpop.permute.xlu1 %1866 }
 0x128   : > { %1904 = vst.msk [vmem:[#allocation3 + $0x2c] sm:$0xf] %vm1892_vm11, %v1867_v42 }
 0x129   : > { %v1865_v1 = vpop.permute.xlu0 %1864  ;;  %1854 = vrot.lane.b32.xlu1 %v4020_v10, %s3075_s8  ;;  %v1915_v10 = vld [vmem:[#allocation2 + $0x7a] sm:$0xff] }
 0x12a   : > { %1903 = vst.msk [vmem:[#allocation3 + $0x28] sm:$0xf] %vm1892_vm11, %v1865_v1  ;;  %v2797_v12 = vpack.c.bf16 %v1915_v10, %v1915_v10 }
 0x12b   : > { %1852 = vrot.lane.b32.xlu0 %v4025_v19, %s3075_s8  ;;  %v1976_v63 = vpop.permute.xlu1 %1975  ;;  %v1924_v19 = vld [vmem:[#allocation2 + $0xe2] sm:$0xff] }
 0x12c   : > { %2023 = vst.msk [vmem:[#allocation3 + $0x4] sm:$0xf] %vm2021_vm13, %v1976_v63 }
 0x12d   : > { %v1974_v53 = vpop.permute.xlu0 %1973  ;;  %1870 = vrot.lane.b32.xlu1 %v4030_v24, %s3075_s8  ;;  %v1923_v24 = vld [vmem:[#allocation2 + $0xda] sm:$0xff] }
 0x12e   : > { %2022 = vst.msk [vmem:[#allocation3] sm:$0xf] %vm2021_vm13, %v1974_v53  ;;  %v2805_v20 = vpack.c.bf16 %v1923_v24, %v1923_v24 }
 0x12f   : > { %1868 = vrot.lane.b32.xlu0 %v4035_v11, %s3075_s8  ;;  %v1992_v58 = vpop.permute.xlu1 %1991  ;;  %v2806_v11 = vpack.c.bf16 %v1924_v19, %v1924_v19 }
 0x130   : > { %2031 = vst.msk [vmem:[#allocation3 + $0x24] sm:$0xf] %vm2021_vm13, %v1992_v58 }
 0x131   : > { %v1990_v50 = vpop.permute.xlu0 %1989  ;;  %1858 = vrot.lane.b32.xlu1 %v2782_v14, %s3075_s8 }
 0x132   : > { %2030 = vst.msk [vmem:[#allocation3 + $0x20] sm:$0xf] %vm2021_vm13, %v1990_v50 }
 0x133   : > { %1856 = vrot.lane.b32.xlu0 %v2781_v44, %s3075_s8  ;;  %v1079_v47 = vpop.permute.xlu1 %1078 }
 0x134   : > { %1122 = vst.msk [vmem:[#allocation3 + $0x14] sm:$0xf] %vm1116_vm5, %v1079_v47 }
 0x135   : > { %v1077_v51 = vpop.permute.xlu0 %1076  ;;  %1874 = vrot.lane.b32.xlu1 %v2790_v9, %s3075_s8  ;;  %v2898_v35 = vld [vmem:[#allocation3] sm:$0xff]  }
 0x136   : > { %1121 = vst.msk [vmem:[#allocation3 + $0x10] sm:$0xf] %vm1116_vm5, %v1077_v51  ;;  %2824 = vmatprep.mubr.msk.bf16.mxu0 %vm2114_vm15, %v2898_v35 }
 0x137   : > { %1872 = vrot.lane.b32.xlu0 %v2789_v7, %s3075_s8  ;;  %v1095_v17 = vpop.permute.xlu1 %1094  ;;  %s4219_s8 = scalar_lea.vmem %s4304_s6, %s2458_s20 }
 0x138   : > { %1130 = vst.msk [vmem:[#allocation3 + $0x34] sm:$0xf] %vm1116_vm5, %v1095_v17 }
 0x139   : > { %v1093_v2 = vpop.permute.xlu0 %1092  ;;  %1983 = vrot.lane.b32.xlu1 %v4052_v52, %s3076_s9  ;;  %v2900_v16 = vld [vmem:[#allocation3 + $0x20] sm:$0xff]  }
 0x13a   : > { %1129 = vst.msk [vmem:[#allocation3 + $0x30] sm:$0xf] %vm1116_vm5, %v1093_v2  ;;  %2832 = vmatprep.mubr.msk.bf16.mxu1 %vm2114_vm15, %v2900_v16 }
 0x13b   : > { %1981 = vrot.lane.b32.xlu0 %v4057_v33, %s3076_s9  ;;  %v1980_v40 = vpop.permute.xlu1 %1979 }
 0x13c   : > { %2025 = vst.msk [vmem:[#allocation3 + $0xc] sm:$0xf] %vm2021_vm13, %v1980_v40 }
 0x13d   : > { %v1978_v45 = vpop.permute.xlu0 %1977  ;;  %1999 = vrot.lane.b32.xlu1 %v4062_v27, %s3076_s9 }
 0x13e   : > { %2024 = vst.msk [vmem:[#allocation3 + $0x8] sm:$0xf] %vm2021_vm13, %v1978_v45 }
 0x13f   : > { %1997 = vrot.lane.b32.xlu0 %v4067_v30, %s3076_s9  ;;  %v1996_v57 = vpop.permute.xlu1 %1995 }
 0x140   : > { %2033 = vst.msk [vmem:[#allocation3 + $0x2c] sm:$0xf] %vm2021_vm13, %v1996_v57 }
 0x141   : > { %v1994_v62 = vpop.permute.xlu0 %1993  ;;  %1987 = vrot.lane.b32.xlu1 %v2798_v34, %s3076_s9 }
 0x142   : > { %2032 = vst.msk [vmem:[#allocation3 + $0x28] sm:$0xf] %vm2021_vm13, %v1994_v62 }
 0x143   : > { %1985 = vrot.lane.b32.xlu0 %v2797_v12, %s3076_s9  ;;  %v1083_v21 = vpop.permute.xlu1 %1082 }
 0x144   : > { %1124 = vst.msk [vmem:[#allocation3 + $0x1c] sm:$0xf] %vm1116_vm5, %v1083_v21 }
 0x145   : > { %v1081_v36 = vpop.permute.xlu0 %1080  ;;  %2003 = vrot.lane.b32.xlu1 %v2806_v11, %s3076_s9  ;;  %v2903_v22 = vld [vmem:[#allocation3 + $0x8] sm:$0xff]  }
 0x146   : > { %1123 = vst.msk [vmem:[#allocation3 + $0x18] sm:$0xf] %vm1116_vm5, %v1081_v36  ;;  %2825 = vmatmul.mubr.msk.bf16.vlgmr.msra.gmra.mxu0 %vm2114_vm15, %v2903_v22  ;;  %v4212_v22 = vld [vmem:[%s4303_s5] ss:$0 sm:$0xff] }
 0x147   : > { %2001 = vrot.lane.b32.xlu0 %v2805_v20, %s3076_s9  ;;  %v1099_v23 = vpop.permute.xlu1 %1098 }
 0x148   : > { %1132 = vst.msk [vmem:[#allocation3 + $0x3c] sm:$0xf] %vm1116_vm5, %v1099_v23 }
 0x149   : > { %v1097_v13 = vpop.permute.xlu0 %1096  ;;  %v2904_v0 = vld [vmem:[#allocation3 + $0x28] sm:$0xff]  }
 0x14a   : > { %1131 = vst.msk [vmem:[#allocation3 + $0x38] sm:$0xf] %vm1116_vm5, %v1097_v13  ;;  %2833 = vmatmul.mubr.msk.bf16.vlgmr.msra.gmra.mxu1 %vm2114_vm15, %v2904_v0  ;;  %v2265_v13 = vld [vmem:[%s4207_s29 + $0x10] sm:$0xff] }
 0x14b   : > { %v1208_v52 = vpop.permute.xlu1 %1207 }
 0x14c   : > { %1251 = vst.msk [vmem:[#allocation3 + $0x14] sm:$0xf] %vm1245_vm7, %v1208_v52 }
 0x14d   : > { %v1206_v25 = vpop.permute.xlu0 %1205 }
 0x14e   : > { %1250 = vst.msk [vmem:[#allocation3 + $0x10] sm:$0xf] %vm1245_vm7, %v1206_v25  ;;  %v2263_v25 = vld [vmem:[%s4207_s29] sm:$0xff] }
 0x14f   : > { %v1224_v60 = vpop.permute.xlu1 %1223 }
 0x150   : > { %1259 = vst.msk [vmem:[#allocation3 + $0x34] sm:$0xf] %vm1245_vm7, %v1224_v60 }
 0x151   : > { %v1222_v33 = vpop.permute.xlu0 %1221 }
 0x152   : > { %1258 = vst.msk [vmem:[#allocation3 + $0x30] sm:$0xf] %vm1245_vm7, %v1222_v33 }
 0x153   : > { %v1212_v48 = vpop.permute.xlu1 %1211 }
 0x154   : > { %1253 = vst.msk [vmem:[#allocation3 + $0x1c] sm:$0xf] %vm1245_vm7, %v1212_v48 }
 0x155   : > { %v1210_v43 = vpop.permute.xlu0 %1209 }
 0x156   : > { %1252 = vst.msk [vmem:[#allocation3 + $0x18] sm:$0xf] %vm1245_vm7, %v1210_v43  ;;  %v2266_v43 = vld [vmem:[%s4207_s29 + $0x18] sm:$0xff] }
 0x157   : > { %v1228_v27 = vpop.permute.xlu1 %1227 }
 0x158   : > { %1261 = vst.msk [vmem:[#allocation3 + $0x3c] sm:$0xf] %vm1245_vm7, %v1228_v27 }
 0x159   : > { %v1226_v28 = vpop.permute.xlu0 %1225 }
 0x15a   : > { %1260 = vst.msk [vmem:[#allocation3 + $0x38] sm:$0xf] %vm1245_vm7, %v1226_v28  ;;  %v2273_v28 = vld [vmem:[%s4207_s29 + $0x50] sm:$0xff] }
 0x15b   : > { %v1338_v30 = vpop.permute.xlu1 %1337 }
 0x15c   : > { %1381 = vst.msk [vmem:[#allocation3 + $0x14] sm:$0xf] %vm1375_vm14, %v1338_v30 }
 0x15d   : > { %v1336_v26 = vpop.permute.xlu0 %1335 }
 0x15e   : > { %1380 = vst.msk [vmem:[#allocation3 + $0x10] sm:$0xf] %vm1375_vm14, %v1336_v26 }
 0x15f   : > { %v1354_v31 = vpop.permute.xlu1 %1353 }
 0x160   : > { %1389 = vst.msk [vmem:[#allocation3 + $0x34] sm:$0xf] %vm1375_vm14, %v1354_v31 }
 0x161   : > { %v1352_v54 = vpop.permute.xlu0 %1351 }
 0x162   : > { %1388 = vst.msk [vmem:[#allocation3 + $0x30] sm:$0xf] %vm1375_vm14, %v1352_v54 }
 0x163   : > { %v1342_v37 = vpop.permute.xlu1 %1341 }
 0x164   : > { %1383 = vst.msk [vmem:[#allocation3 + $0x1c] sm:$0xf] %vm1375_vm14, %v1342_v37  ;;  %v2264_v37 = vld [vmem:[%s4207_s29 + $0x8] sm:$0xff] }
 0x165   : > { %v1340_v4 = vpop.permute.xlu0 %1339 }
 0x166   : > { %1382 = vst.msk [vmem:[#allocation3 + $0x18] sm:$0xf] %vm1375_vm14, %v1340_v4 }
 0x167   : > { %v1358_v6 = vpop.permute.xlu1 %1357 }
 0x168   : > { %1391 = vst.msk [vmem:[#allocation3 + $0x3c] sm:$0xf] %vm1375_vm14, %v1358_v6  ;;  %v2271_v6 = vld [vmem:[%s4207_s29 + $0x40] sm:$0xff] }
 0x169   : > { %v1356_v38 = vpop.permute.xlu0 %1355 }
 0x16a   : > { %1390 = vst.msk [vmem:[#allocation3 + $0x38] sm:$0xf] %vm1375_vm14, %v1356_v38 }
 0x16b   : > { %v1467_v32 = vpop.permute.xlu1 %1466 }
 0x16c   : > { %1510 = vst.msk [vmem:[#allocation3 + $0x14] sm:$0xf] %vm1504_vm8, %v1467_v32 }
 0x16d   : > { %v1465_v39 = vpop.permute.xlu0 %1464 }
 0x16e   : > { %1509 = vst.msk [vmem:[#allocation3 + $0x10] sm:$0xf] %vm1504_vm8, %v1465_v39 }
 0x16f   : > { %v1483_v8 = vpop.permute.xlu1 %1482 }
 0x170   : > { %1518 = vst.msk [vmem:[#allocation3 + $0x34] sm:$0xf] %vm1504_vm8, %v1483_v8 }
 0x171   : > { %v1481_v46 = vpop.permute.xlu0 %1480 }
 0x172   : > { %1517 = vst.msk [vmem:[#allocation3 + $0x30] sm:$0xf] %vm1504_vm8, %v1481_v46 }
 0x173   : > { %v1471_v56 = vpop.permute.xlu1 %1470 }
 0x174   : > { %1512 = vst.msk [vmem:[#allocation3 + $0x1c] sm:$0xf] %vm1504_vm8, %v1471_v56  ;;  %v2274_v56 = vld [vmem:[%s4207_s29 + $0x58] sm:$0xff] }
 0x175   : > { %v1469_v41 = vpop.permute.xlu0 %1468 }
 0x176   : > { %1511 = vst.msk [vmem:[#allocation3 + $0x18] sm:$0xf] %vm1504_vm8, %v1469_v41 }
 0x177   : > { %v1487_v3 = vpop.permute.xlu1 %1486 }
 0x178   : > { %1520 = vst.msk [vmem:[#allocation3 + $0x3c] sm:$0xf] %vm1504_vm8, %v1487_v3 }
 0x179   : > { %v1485_v15 = vpop.permute.xlu0 %1484 }
 0x17a   : > { %1519 = vst.msk [vmem:[#allocation3 + $0x38] sm:$0xf] %vm1504_vm8, %v1485_v15 }
 0x17b   : > { %v1596_v49 = vpop.permute.xlu1 %1595 }
 0x17c   : > { %1639 = vst.msk [vmem:[#allocation3 + $0x14] sm:$0xf] %vm1633_vm9, %v1596_v49 }
 0x17d   : > { %v1594_v5 = vpop.permute.xlu0 %1593 }
 0x17e   : > { %1638 = vst.msk [vmem:[#allocation3 + $0x10] sm:$0xf] %vm1633_vm9, %v1594_v5  ;;  %v2272_v5 = vld [vmem:[%s4207_s29 + $0x48] sm:$0xff] }
 0x17f   : > { %v1612_v42 = vpop.permute.xlu1 %1611 }
 0x180   : > { %1647 = vst.msk [vmem:[#allocation3 + $0x34] sm:$0xf] %vm1633_vm9, %v1612_v42 }
 0x181   : > { %v1610_v1 = vpop.permute.xlu0 %1609 }
 0x182   : > { %1646 = vst.msk [vmem:[#allocation3 + $0x30] sm:$0xf] %vm1633_vm9, %v1610_v1 }
 0x183   : > { %v1600_v55 = vpop.permute.xlu1 %1599 }
 0x184   : > { %1641 = vst.msk [vmem:[#allocation3 + $0x1c] sm:$0xf] %vm1633_vm9, %v1600_v55 }
 0x185   : > { %v1598_v63 = vpop.permute.xlu0 %1597 }
 0x186   : > { %1640 = vst.msk [vmem:[#allocation3 + $0x18] sm:$0xf] %vm1633_vm9, %v1598_v63 }
 0x187   : > { %v1616_v59 = vpop.permute.xlu1 %1615 }
 0x188   : > { %1649 = vst.msk [vmem:[#allocation3 + $0x3c] sm:$0xf] %vm1633_vm9, %v1616_v59  ;;  %v2269_v59 = vld [vmem:[%s4207_s29 + $0x30] sm:$0xff] }
 0x189   : > { %v1614_v53 = vpop.permute.xlu0 %1613 }
 0x18a   : > { %1648 = vst.msk [vmem:[#allocation3 + $0x38] sm:$0xf] %vm1633_vm9, %v1614_v53 }
 0x18b   : > { %v1726_v14 = vpop.permute.xlu1 %1725 }
 0x18c   : > { %1769 = vst.msk [vmem:[#allocation3 + $0x14] sm:$0xf] %vm1763_vm10, %v1726_v14 }
 0x18d   : > { %v1724_v18 = vpop.permute.xlu0 %1723 }
 0x18e   : > { %1768 = vst.msk [vmem:[#allocation3 + $0x10] sm:$0xf] %vm1763_vm10, %v1724_v18  ;;  %v2267_v18 = vld [vmem:[%s4207_s29 + $0x20] sm:$0xff] }
 0x18f   : > { %v1742_v58 = vpop.permute.xlu1 %1741 }
 0x190   : > { %1777 = vst.msk [vmem:[#allocation3 + $0x34] sm:$0xf] %vm1763_vm10, %v1742_v58 }
 0x191   : > { %v1740_v44 = vpop.permute.xlu0 %1739 }
 0x192   : > { %1776 = vst.msk [vmem:[#allocation3 + $0x30] sm:$0xf] %vm1763_vm10, %v1740_v44 }
 0x193   : > { %v1730_v61 = vpop.permute.xlu1 %1729 }
 0x194   : > { %1771 = vst.msk [vmem:[#allocation3 + $0x1c] sm:$0xf] %vm1763_vm10, %v1730_v61 }
 0x195   : > { %v1728_v50 = vpop.permute.xlu0 %1727 }
 0x196   : > { %1770 = vst.msk [vmem:[#allocation3 + $0x18] sm:$0xf] %vm1763_vm10, %v1728_v50  ;;  %v2270_v50 = vld [vmem:[%s4207_s29 + $0x38] sm:$0xff] }
 0x197   : > { %v1746_v9 = vpop.permute.xlu1 %1745 }
 0x198   : > { %1779 = vst.msk [vmem:[#allocation3 + $0x3c] sm:$0xf] %vm1763_vm10, %v1746_v9 }
 0x199   : > { %v1744_v47 = vpop.permute.xlu0 %1743 }
 0x19a   : > { %1778 = vst.msk [vmem:[#allocation3 + $0x38] sm:$0xf] %vm1763_vm10, %v1744_v47  ;;  %v2277_v47 = vld [vmem:[%s4207_s29 + $0x70] sm:$0xff] }
 0x19b   : > { %v1855_v7 = vpop.permute.xlu1 %1854 }
 0x19c   : > { %1898 = vst.msk [vmem:[#allocation3 + $0x14] sm:$0xf] %vm1892_vm11, %v1855_v7 }
 0x19d   : > { %v1853_v51 = vpop.permute.xlu0 %1852 }
 0x19e   : > { %1897 = vst.msk [vmem:[#allocation3 + $0x10] sm:$0xf] %vm1892_vm11, %v1853_v51 }
 0x19f   : > { %v1871_v35 = vpop.permute.xlu1 %1870 }
 0x1a0   : > { %1906 = vst.msk [vmem:[#allocation3 + $0x34] sm:$0xf] %vm1892_vm11, %v1871_v35 }
 0x1a1   : > { %v1869_v17 = vpop.permute.xlu0 %1868 }
 0x1a2   : > { %1905 = vst.msk [vmem:[#allocation3 + $0x30] sm:$0xf] %vm1892_vm11, %v1869_v17 }
 0x1a3   : > { %v1859_v2 = vpop.permute.xlu1 %1858 }
 0x1a4   : > { %1900 = vst.msk [vmem:[#allocation3 + $0x1c] sm:$0xf] %vm1892_vm11, %v1859_v2  ;;  %v2268_v2 = vld [vmem:[%s4207_s29 + $0x28] sm:$0xff] }
 0x1a5   : > { %v1857_v16 = vpop.permute.xlu0 %1856 }
 0x1a6   : > { %1899 = vst.msk [vmem:[#allocation3 + $0x18] sm:$0xf] %vm1892_vm11, %v1857_v16 }
 0x1a7   : > { %v1875_v29 = vpop.permute.xlu1 %1874 }
 0x1a8   : > { %1908 = vst.msk [vmem:[#allocation3 + $0x3c] sm:$0xf] %vm1892_vm11, %v1875_v29  ;;  %v2275_v29 = vld [vmem:[%s4207_s29 + $0x60] sm:$0xff] }
 0x1a9   : > { %v1873_v40 = vpop.permute.xlu0 %1872 }
 0x1aa   : > { %1907 = vst.msk [vmem:[#allocation3 + $0x38] sm:$0xf] %vm1892_vm11, %v1873_v40 }
 0x1ab   : > { %v1984_v10 = vpop.permute.xlu1 %1983 }
 0x1ac   : > { %2027 = vst.msk [vmem:[#allocation3 + $0x14] sm:$0xf] %vm2021_vm13, %v1984_v10 }
 0x1ad   : > { %v1982_v45 = vpop.permute.xlu0 %1981 }
 0x1ae   : > { %2026 = vst.msk [vmem:[#allocation3 + $0x10] sm:$0xf] %vm2021_vm13, %v1982_v45 }
 0x1af   : > { %v2000_v34 = vpop.permute.xlu1 %1999 }
 0x1b0   : > { %2035 = vst.msk [vmem:[#allocation3 + $0x34] sm:$0xf] %vm2021_vm13, %v2000_v34 }
 0x1b1   : > { %v1998_v19 = vpop.permute.xlu0 %1997 }
 0x1b2   : > { %2034 = vst.msk [vmem:[#allocation3 + $0x30] sm:$0xf] %vm2021_vm13, %v1998_v19 }
 0x1b3   : > { %v1988_v57 = vpop.permute.xlu1 %1987 }
 0x1b4   : > { %2029 = vst.msk [vmem:[#allocation3 + $0x1c] sm:$0xf] %vm2021_vm13, %v1988_v57  ;;  %v2278_v57 = vld [vmem:[%s4207_s29 + $0x78] sm:$0xff] }
 0x1b5   : > { %v1986_v12 = vpop.permute.xlu0 %1985  ;;  %v2905_v24 = vld [vmem:[#allocation3 + $0x10] sm:$0xff]  }
 0x1b6   : > { %2028 = vst.msk [vmem:[#allocation3 + $0x18] sm:$0xf] %vm2021_vm13, %v1986_v12  ;;  %2828 = vmatprep.mubr.msk.bf16.mxu0 %vm2114_vm15, %v2905_v24 }
 0x1b7   : > { %v2004_v62 = vpop.permute.xlu1 %2003 }
 0x1b8   : > { %2037 = vst.msk [vmem:[#allocation3 + $0x3c] sm:$0xf] %vm2021_vm13, %v2004_v62 }
 0x1b9   : > { %v2002_v11 = vpop.permute.xlu0 %2001  ;;  %v2906_v21 = vld [vmem:[#allocation3 + $0x30] sm:$0xff]  }
 0x1ba   : > { %2036 = vst.msk [vmem:[#allocation3 + $0x38] sm:$0xf] %vm2021_vm13, %v2002_v11  ;;  %2836 = vmatprep.mubr.msk.bf16.mxu1 %vm2114_vm15, %v2906_v21  ;;  %v2276_v21 = vld [vmem:[%s4207_s29 + $0x68] sm:$0xff] }
 0x1bd   : > { %v2907_v20 = vld [vmem:[#allocation3 + $0x18] sm:$0xff]  }
 0x1be   : > { %2829 = vmatmul.mubr.msk.bf16.gmra.mxu0 %vm2114_vm15, %v2907_v20 }
 0x1c1   : > { %v2908_v36 = vld [vmem:[#allocation3 + $0x38] sm:$0xff]  }
 0x1c2   : > { %2837 = vmatmul.mubr.msk.bf16.gmra.mxu1 %vm2114_vm15, %v2908_v36 }
 0x206   : > { %v2826_v23 = vpop.f32.mrf.mxu0 }
 0x207   : > { %v2249_v0 = vadd.f32 %v2826_v23, %v4212_v22 }
 0x208   : > { %v2177_v52 = vpop.f32.mrf.mxu0 }
 0x209   : > { %v2281_v60 = vadd.f32 %v2265_v13, %v2249_v0  ;;  %v2247_v33 = vadd.f32 %v4212_v22, %v2177_v52 }
 0x20a   : > { %v2827_v48 = vpop.f32.mrf.mxu0  ;;  %v2834_v27 = vpop.f32.mrf.mxu1 }
 0x20b   : > { %2297 = vst.msk [vmem:[%s4219_s8 + $0x10] sm:$0xff] %vm875_vm6, %v2281_v60  ;;  %v2279_v30 = vadd.f32 %v2263_v25, %v2247_v33  ;;  %v2250_v26 = vadd.f32 %v2827_v48, %v4212_v22  ;;  %v2257_v31 = vadd.f32 %v2834_v27, %v4212_v22 }
 0x20c   : > { %v2180_v54 = vpop.f32.mrf.mxu0  ;;  %v2209_v4 = vpop.f32.mrf.mxu1 }
 0x20d   : > { %2295 = vst.msk [vmem:[%s4219_s8] sm:$0xff] %vm875_vm6, %v2279_v30  ;;  %v2282_v38 = vadd.f32 %v2266_v43, %v2250_v26  ;;  %v2289_v32 = vadd.f32 %v2273_v28, %v2257_v31  ;;  %v2248_v39 = vadd.f32 %v4212_v22, %v2180_v54  ;;  %v2255_v8 = vadd.f32 %v4212_v22, %v2209_v4 }
 0x20e   : > { %v2835_v46 = vpop.f32.mrf.mxu1 }
 0x20f   : > { %2298 = vst.msk [vmem:[%s4219_s8 + $0x18] sm:$0xff] %vm875_vm6, %v2282_v38  ;;  %2305 = vst.msk [vmem:[%s4219_s8 + $0x50] sm:$0xff] %vm875_vm6, %v2289_v32  ;;  %v2280_v41 = vadd.f32 %v2264_v37, %v2248_v39  ;;  %v2287_v3 = vadd.f32 %v2271_v6, %v2255_v8  ;;  %v2258_v15 = vadd.f32 %v2835_v46, %v4212_v22 }
 0x210   : > { %v2212_v49 = vpop.f32.mrf.mxu1 }
 0x211   : > { %2296 = vst.msk [vmem:[%s4219_s8 + $0x8] sm:$0xff] %vm875_vm6, %v2280_v41  ;;  %2303 = vst.msk [vmem:[%s4219_s8 + $0x40] sm:$0xff] %vm875_vm6, %v2287_v3  ;;  %v2290_v42 = vadd.f32 %v2274_v56, %v2258_v15  ;;  %v2256_v1 = vadd.f32 %v4212_v22, %v2212_v49 }
 0x213   : > { %2306 = vst.msk [vmem:[%s4219_s8 + $0x58] sm:$0xff] %vm875_vm6, %v2290_v42  ;;  %v2288_v55 = vadd.f32 %v2272_v5, %v2256_v1 }
 0x215   : > { %2304 = vst.msk [vmem:[%s4219_s8 + $0x48] sm:$0xff] %vm875_vm6, %v2288_v55 }
 0x27e   : > { %v2830_v63 = vpop.f32.mrf.mxu0 }
 0x27f   : > { %v2253_v53 = vadd.f32 %v2830_v63, %v4212_v22 }
 0x280   : > { %v2193_v14 = vpop.f32.mrf.mxu0 }
 0x281   : > { %v2285_v58 = vadd.f32 %v2269_v59, %v2253_v53  ;;  %v2251_v44 = vadd.f32 %v4212_v22, %v2193_v14 }
 0x282   : > { %v2831_v61 = vpop.f32.mrf.mxu0  ;;  %v2838_v9 = vpop.f32.mrf.mxu1 }
 0x283   : > { %2301 = vst.msk [vmem:[%s4219_s8 + $0x30] sm:$0xff] %vm875_vm6, %v2285_v58  ;;  %v2283_v7 = vadd.f32 %v2267_v18, %v2251_v44  ;;  %v2254_v51 = vadd.f32 %v2831_v61, %v4212_v22  ;;  %v2261_v35 = vadd.f32 %v2838_v9, %v4212_v22 }
 0x284   : > { %v2196_v17 = vpop.f32.mrf.mxu0  ;;  %v2225_v16 = vpop.f32.mrf.mxu1 }
 0x285   : > { %2299 = vst.msk [vmem:[%s4219_s8 + $0x20] sm:$0xff] %vm875_vm6, %v2283_v7  ;;  %v2286_v40 = vadd.f32 %v2270_v50, %v2254_v51  ;;  %v2293_v10 = vadd.f32 %v2277_v47, %v2261_v35  ;;  %v2252_v45 = vadd.f32 %v4212_v22, %v2196_v17  ;;  %v2259_v34 = vadd.f32 %v4212_v22, %v2225_v16 }
 0x286   : > { %v2839_v19 = vpop.f32.mrf.mxu1 }
 0x287   : > { %2302 = vst.msk [vmem:[%s4219_s8 + $0x38] sm:$0xff] %vm875_vm6, %v2286_v40  ;;  %2309 = vst.msk [vmem:[%s4219_s8 + $0x70] sm:$0xff] %vm875_vm6, %v2293_v10  ;;  %v2284_v12 = vadd.f32 %v2268_v2, %v2252_v45  ;;  %v2291_v24 = vadd.f32 %v2275_v29, %v2259_v34  ;;  %v2262_v62 = vadd.f32 %v2839_v19, %v4212_v22 }
 0x288   : > { %v2228_v11 = vpop.f32.mrf.mxu1 }
 0x289   : > { %2300 = vst.msk [vmem:[%s4219_s8 + $0x28] sm:$0xff] %vm875_vm6, %v2284_v12  ;;  %2307 = vst.msk [vmem:[%s4219_s8 + $0x60] sm:$0xff] %vm875_vm6, %v2291_v24  ;;  %v2294_v20 = vadd.f32 %v2278_v57, %v2262_v62  ;;  %v2260_v36 = vadd.f32 %v4212_v22, %v2228_v11 }
 0x28b   : > { %2310 = vst.msk [vmem:[%s4219_s8 + $0x78] sm:$0xff] %vm875_vm6, %v2294_v20  ;;  %v2292_v23 = vadd.f32 %v2276_v21, %v2260_v36 }
 0x28d   : > { %2308 = vst.msk [vmem:[%s4219_s8 + $0x68] sm:$0xff] %vm875_vm6, %v2292_v23 }
 0x28e PF: > { %s16_s25 = sadd.s32 1, %s3067_s25   ;;  %s4355_s21 = smov %s3059_s23 }
 0x28f   : > { %p13_p8 = scmp.ge.s32.totalorder %s16_s25, 6   ;;  %s4356_s22 = smov %s3063_s24 }
 0x290   : > { %s4357_s23 = smov %s4360_s26  ;;  %s4358_s24 = smov %s4364_s27 }
 0x291   :  { %15 = sbr.rel (!%p13_p8) target bundleno = 3 (0x3), region = 85 }

</bundles_post_ra>
